<compile_context>
chip_gen: v5e
topology: v5e:2x2
jax: 0.10.0
libtpu: 0.0.40
codegen_flags: <defaults>
</compile_context>

<pallas_src>
import functools
import math

import jax
import jax.numpy as jnp
from jax.experimental import pallas as pl
from jax.experimental.pallas import tpu as pltpu


# ----------------------------------------------------------------------------
# helpers
# ----------------------------------------------------------------------------
def _rup(n, m):
    return ((n + m - 1) // m) * m


def _nb(shape, dtype):
    n = 1
    for d in shape:
        n *= int(d)
    return n * jnp.dtype(dtype).itemsize


def _bf16(a):
    return a if a.dtype == jnp.bfloat16 else a.astype(jnp.bfloat16)


_VMEM_CAP = None


def _vmem_cap():
    """Generation-aware VMEM budget: ~80% of physical per-core VMEM (≈51MiB on v7x,
    ≈102MiB on v5e/v6e); conservative 56MiB fallback if the query is unavailable."""
    global _VMEM_CAP
    if _VMEM_CAP is None:
        cap = None
        try:
            info = pltpu.get_tpu_info()
            for name in ("vmem_capacity_bytes", "vmem_size_bytes", "vmem_bytes"):
                if hasattr(info, name):
                    cap = int(int(getattr(info, name)) * 0.8)
                    break
        except Exception:
            cap = None
        _VMEM_CAP = cap if cap else (56 << 20)
    return _VMEM_CAP


def _cparams(n_grid_axes, *block_bytes):
    need = 2 * sum(block_bytes) + (2 << 20)
    return pltpu.CompilerParams(
        dimension_semantics=("parallel",) * n_grid_axes,
        vmem_limit_bytes=int(min(_vmem_cap(), max(8 << 20, need))),
    )


# ----------------------------------------------------------------------------
# Pallas kernels
# ----------------------------------------------------------------------------
def _mm_bn_kernel(*refs, relu, has_res, has_ds):
    """out = maybe_relu(x @ w + b [+ residual] [+ xs @ wd + bd]).
    BN scales are pre-folded into w / wd, so the epilogue is bias-add only."""
    it = iter(refs)
    x_ref, w_ref, b_ref = next(it), next(it), next(it)
    acc = jnp.dot(x_ref[...], w_ref[...], preferred_element_type=jnp.float32)
    acc = acc + b_ref[...]
    if has_res:
        r_ref = next(it)
        acc = acc + r_ref[...].astype(jnp.float32)
    if has_ds:
        xs_ref, wd_ref, bd_ref = next(it), next(it), next(it)
        acc = acc + jnp.dot(xs_ref[...], wd_ref[...], preferred_element_type=jnp.float32)
        acc = acc + bd_ref[...]
    if relu:
        acc = jnp.maximum(acc, 0.0)
    o_ref = next(it)
    o_ref[...] = acc.astype(o_ref.dtype)


def _conv3x3_bn_kernel(x_ref, w_ref, b_ref, o_ref, s1_ref, s2_ref, *, HWp, Wpad, relu):
    # x_ref: flattened rows of the zero-padded NHWC map (one image); row width Wpad is
    # a multiple of 8 so every di*Wpad tap offset is sublane aligned.  The two dj-shifted
    # copies are staged ONCE into VMEM scratch so all 9 tap windows below are aligned.
    L = s1_ref.shape[0]
    s1_ref[...] = x_ref[1:1 + L, :]
    s2_ref[...] = x_ref[2:2 + L, :]
    cout = w_ref.shape[-1]
    acc = jnp.zeros((HWp, cout), jnp.float32)
    for di in range(3):
        base = di * Wpad
        acc = acc + jnp.dot(x_ref[base:base + HWp, :], w_ref[3 * di + 0],
                            preferred_element_type=jnp.float32)
        acc = acc + jnp.dot(s1_ref[base:base + HWp, :], w_ref[3 * di + 1],
                            preferred_element_type=jnp.float32)
        acc = acc + jnp.dot(s2_ref[base:base + HWp, :], w_ref[3 * di + 2],
                            preferred_element_type=jnp.float32)
    acc = acc + b_ref[...]
    if relu:
        acc = jnp.maximum(acc, 0.0)
    o_ref[...] = acc.astype(o_ref.dtype)


def _maxpool_kernel(ph_ref, o_ref, *, Ho, Wo):
    # ph_ref: (4, Ho+1, Wo+1, C) 2x2 phase split of the -inf padded map (one image).
    m = None
    for di in range(3):
        a, ri = di % 2, di // 2
        for dj in range(3):
            b, rj = dj % 2, dj // 2
            v = ph_ref[2 * a + b, ri:ri + Ho, rj:rj + Wo, :]
            m = v if m is None else jnp.maximum(m, v)
    o_ref[...] = m


def _spatial_attn_kernel(y_ref, w_ref, b_ref, x_ref, gap_ref, s1_ref, s2_ref, *,
                         HWp, Wpad, inv_hw):
    # Fused SpatialAttention tail + GAP for one (head, image):
    #   z   = relu(conv3x3(y)+conv1x3(y)+conv3x1(y))   (BNs folded into w_ref / b_ref)
    #   att = z.sum(channels) ; gap = mean_{h,w}(x * att)   computed as an MXU matvec.
    L = s1_ref.shape[0]
    s1_ref[...] = y_ref[1:1 + L, :]
    s2_ref[...] = y_ref[2:2 + L, :]
    cout = w_ref.shape[-1]
    acc = jnp.zeros((HWp, cout), jnp.float32)
    for di in range(3):
        base = di * Wpad
        acc = acc + jnp.dot(y_ref[base:base + HWp, :], w_ref[3 * di + 0],
                            preferred_element_type=jnp.float32)
        acc = acc + jnp.dot(s1_ref[base:base + HWp, :], w_ref[3 * di + 1],
                            preferred_element_type=jnp.float32)
        acc = acc + jnp.dot(s2_ref[base:base + HWp, :], w_ref[3 * di + 2],
                            preferred_element_type=jnp.float32)
    z = jnp.maximum(acc + b_ref[...], 0.0)
    att = jnp.sum(z, axis=-1, keepdims=True)                        # (HWp, 1) f32
    # gap = (att^T @ x) / (H*W); junk columns of x are zero so they contribute nothing.
    gap = jax.lax.dot_general(att.astype(jnp.bfloat16), x_ref[...],
                              (((0,), (0,)), ((), ())),
                              preferred_element_type=jnp.float32)   # (1, 512)
    gap_ref[...] = gap * inv_hw


def _channel_attn_kernel(g_ref, w1_ref, b1_ref, w2_ref, b2_ref, o_ref):
    # ChannelAttention (one head, all images): Linear(512,32)+BN1d+ReLU+Linear(32,512)
    # +Sigmoid ; out = gap * y.   BN scale folded into w1.
    g = g_ref[...].astype(jnp.float32)
    h = jnp.dot(g.astype(jnp.bfloat16), w1_ref[...], preferred_element_type=jnp.float32)
    h = jnp.maximum(h + b1_ref[...], 0.0)
    v = jnp.dot(h.astype(jnp.bfloat16), w2_ref[...], preferred_element_type=jnp.float32)
    v = v + b2_ref[...]
    y = 1.0 / (1.0 + jnp.exp(-jnp.clip(v, -30.0, 30.0)))            # safe sigmoid
    o_ref[...] = g * y


# ----------------------------------------------------------------------------
# Pallas wrappers
# ----------------------------------------------------------------------------
def matmul_bn(x, w, bias, *, relu, residual=None, ds=None, out_dtype=jnp.bfloat16):
    """maybe_relu(x @ w + bias [+ residual] [+ fused 1x1 downsample]).
    No host-side padding: grid = cdiv(M, tm); the partial last block is masked."""
    M, K = x.shape
    Kw, N = w.shape
    assert K == Kw
    tm = M if M <= 1024 else 1024
    grid_m = pl.cdiv(M, tm)

    args = [_bf16(x), _bf16(w), bias]
    in_specs = [
        pl.BlockSpec((tm, K), lambda i: (i, 0)),
        pl.BlockSpec((K, N), lambda i: (0, 0)),
        pl.BlockSpec((1, N), lambda i: (0, 0)),
    ]
    bb = (_nb((tm, K), jnp.bfloat16) + _nb((K, N), jnp.bfloat16)
          + _nb((1, N), jnp.float32) + _nb((tm, N), out_dtype))

    has_res = residual is not None
    has_ds = ds is not None
    if has_res:
        args.append(_bf16(residual))
        in_specs.append(pl.BlockSpec((tm, N), lambda i: (i, 0)))
        bb += _nb((tm, N), jnp.bfloat16)
    if has_ds:
        xs, wd, bd = ds
        Kd = xs.shape[1]
        args += [_bf16(xs), _bf16(wd), bd]
        in_specs += [
            pl.BlockSpec((tm, Kd), lambda i: (i, 0)),
            pl.BlockSpec((Kd, N), lambda i: (0, 0)),
            pl.BlockSpec((1, N), lambda i: (0, 0)),
        ]
        bb += (_nb((tm, Kd), jnp.bfloat16) + _nb((Kd, N), jnp.bfloat16)
               + _nb((1, N), jnp.float32))

    kernel = functools.partial(_mm_bn_kernel, relu=relu, has_res=has_res, has_ds=has_ds)
    return pl.pallas_call(
        kernel,
        out_shape=jax.ShapeDtypeStruct((M, N), out_dtype),
        grid=(grid_m,),
        in_specs=in_specs,
        out_specs=pl.BlockSpec((tm, N), lambda i: (i, 0)),
        compiler_params=_cparams(1, bb),
    )(*args)


def conv3x3_bn(x, w9, bias, relu=True):
    """3x3 / stride 1 / pad 1 conv + folded BN (+ReLU) on NHWC, direct (no im2col)."""
    B, H, W, Cin = x.shape
    Cout = w9.shape[-1]
    Hp = H + 2
    Wpad = _rup(W + 2, 8)                # sublane-aligned padded row width
    HWp = H * Wpad
    L = (H + 2) * Wpad                   # staged shifted-copy length (multiple of 8)
    ROWS = L + 8                         # slack so shift/tap windows stay in bounds
    xp = jnp.pad(_bf16(x), ((0, 0), (1, 1), (1, Wpad - W - 1), (0, 0)))
    xf = jnp.pad(xp.reshape(B, Hp * Wpad, Cin), ((0, 0), (0, 8), (0, 0)))
    kernel = functools.partial(_conv3x3_bn_kernel, HWp=HWp, Wpad=Wpad, relu=relu)
    bb = (_nb((ROWS, Cin), jnp.bfloat16) + _nb((9, Cin, Cout), jnp.bfloat16)
          + _nb((1, Cout), jnp.float32) + _nb((HWp, Cout), jnp.bfloat16)
          + 2 * _nb((L, Cin), jnp.bfloat16))
    out = pl.pallas_call(
        kernel,
        out_shape=jax.ShapeDtypeStruct((B, HWp, Cout), jnp.bfloat16),
        grid=(B,),
        in_specs=[
            pl.BlockSpec((None, ROWS, Cin), lambda b: (b, 0, 0)),
            pl.BlockSpec((9, Cin, Cout), lambda b: (0, 0, 0)),
            pl.BlockSpec((1, Cout), lambda b: (0, 0)),
        ],
        out_specs=pl.BlockSpec((None, HWp, Cout), lambda b: (b, 0, 0)),
        scratch_shapes=[pltpu.VMEM((L, Cin), jnp.bfloat16),
                        pltpu.VMEM((L, Cin), jnp.bfloat16)],
        compiler_params=_cparams(1, bb),
    )(xf, w9, bias)
    # TODO(synk): this compaction is still one XLA strided copy per conv; carrying the
    # Wpad-wide layout through the following fused 1x1 conv would remove it.
    return out.reshape(B, H, Wpad, Cout)[:, :, :W, :]


def maxpool_3x3_s2_ceil(x):
    """MaxPool2d(kernel=3, stride=2, padding=0, ceil_mode=True) on NHWC."""
    B, H, W, C = x.shape
    Ho = -(-(H - 3) // 2) + 1
    Wo = -(-(W - 3) // 2) + 1
    Hp, Wp = 2 * Ho + 1, 2 * Wo + 1
    xp = jnp.pad(x, ((0, 0), (0, Hp - H), (0, Wp - W), (0, 0)),
                 constant_values=-jnp.inf)
    Hh, Wh = Ho + 1, Wo + 1
    phases = []
    for a in range(2):
        for b in range(2):
            p = xp[:, a::2, b::2, :]
            p = jnp.pad(p, ((0, 0), (0, Hh - p.shape[1]), (0, Wh - p.shape[2]), (0, 0)),
                        constant_values=-jnp.inf)
            phases.append(p)
    ph = jnp.stack(phases, axis=1)                                  # (B, 4, Hh, Wh, C)
    kernel = functools.partial(_maxpool_kernel, Ho=Ho, Wo=Wo)
    bb = _nb((4, Hh, Wh, C), x.dtype) + _nb((Ho, Wo, C), x.dtype)
    return pl.pallas_call(
        kernel,
        out_shape=jax.ShapeDtypeStruct((B, Ho, Wo, C), x.dtype),
        grid=(B,),
        in_specs=[pl.BlockSpec((None, 4, Hh, Wh, C), lambda b: (b, 0, 0, 0, 0))],
        out_specs=pl.BlockSpec((None, Ho, Wo, C), lambda b: (b, 0, 0, 0)),
        compiler_params=_cparams(1, bb),
    )(ph)


def spatial_attention_gap(y_all, x512, w9_all, bias_all):
    """Fused SpatialAttention tail + x*att + GAP for ALL heads; grid=(num_head, B).

    y_all : (B, H, W, num_head*256)  per-head conv1x1 outputs (concatenated on C)
    x512  : (B, H, W, 512)
    Returns (num_head, B, 512) float32."""
    B, H, W, Ctot = y_all.shape
    nh = w9_all.shape[0]
    Cm = Ctot // nh
    Cout = x512.shape[-1]
    Hp = H + 2
    Wpad = _rup(W + 2, 8)
    HWp = H * Wpad
    L = (H + 2) * Wpad
    ROWS = L + 8
    yp = jnp.pad(_bf16(y_all), ((0, 0), (1, 1), (1, Wpad - W - 1), (0, 0)))
    yf = jnp.pad(yp.reshape(B, Hp * Wpad, Ctot), ((0, 0), (0, 8), (0, 0)))
    xf = jnp.pad(_bf16(x512), ((0, 0), (0, 0), (0, Wpad - W), (0, 0))
                 ).reshape(B, HWp, Cout)
    kernel = functools.partial(_spatial_attn_kernel, HWp=HWp, Wpad=Wpad,
                               inv_hw=1.0 / float(H * W))
    bb = (_nb((ROWS, Cm), jnp.bfloat16) + _nb((9, Cm, Cout), jnp.bfloat16)
          + _nb((1, Cout), jnp.float32) + _nb((HWp, Cout), jnp.bfloat16)
          + _nb((1, Cout), jnp.float32) + 2 * _nb((L, Cm), jnp.bfloat16))
    return pl.pallas_call(
        kernel,
        out_shape=jax.ShapeDtypeStruct((nh, B, Cout), jnp.float32),
        grid=(nh, B),
        in_specs=[
            pl.BlockSpec((None, ROWS, Cm), lambda h, b: (b, 0, h)),
            pl.BlockSpec((None, 9, Cm, Cout), lambda h, b: (h, 0, 0, 0)),
            pl.BlockSpec((None, 1, Cout), lambda h, b: (h, 0, 0)),
            pl.BlockSpec((None, HWp, Cout), lambda h, b: (b, 0, 0)),
        ],
        out_specs=pl.BlockSpec((None, 1, Cout), lambda h, b: (h, b, 0)),
        scratch_shapes=[pltpu.VMEM((L, Cm), jnp.bfloat16),
                        pltpu.VMEM((L, Cm), jnp.bfloat16)],
        compiler_params=_cparams(2, bb),
    )(yf, w9_all, bias_all, xf)


def channel_attention(gap, w1_all, b1_all, w2_all, b2_all):
    """Batched ChannelAttention: one pallas_call, grid=(num_head,)."""
    nh, B, C = gap.shape
    Ch = w1_all.shape[-1]
    bb = (2 * _nb((B, C), jnp.float32) + _nb((C, Ch), jnp.bfloat16)
          + _nb((Ch, C), jnp.bfloat16) + _nb((1, Ch), jnp.float32)
          + _nb((1, C), jnp.float32))
    return pl.pallas_call(
        _channel_attn_kernel,
        out_shape=jax.ShapeDtypeStruct((nh, B, C), jnp.float32),
        grid=(nh,),
        in_specs=[
            pl.BlockSpec((None, B, C), lambda h: (h, 0, 0)),
            pl.BlockSpec((None, C, Ch), lambda h: (h, 0, 0)),
            pl.BlockSpec((None, 1, Ch), lambda h: (h, 0, 0)),
            pl.BlockSpec((None, Ch, C), lambda h: (h, 0, 0)),
            pl.BlockSpec((None, 1, C), lambda h: (h, 0, 0)),
        ],
        out_specs=pl.BlockSpec((None, B, C), lambda h: (h, 0, 0)),
        compiler_params=_cparams(1, bb),
    )(gap, w1_all, b1_all, w2_all, b2_all)


# ----------------------------------------------------------------------------
# JAX glue (layout only; heavy compute happens in the kernels above)
# ----------------------------------------------------------------------------
def im2col(x, kh, kw, stride, pad):
    """Used for the 7x7/s2 stem conv (3 channels) and the K=576 layer1 3x3 convs."""
    B, H, W, C = x.shape
    xp = jnp.pad(x, ((0, 0), (pad, pad), (pad, pad), (0, 0)))
    Ho = (H + 2 * pad - kh) // stride + 1
    Wo = (W + 2 * pad - kw) // stride + 1
    cols = []
    for i in range(kh):
        for j in range(kw):
            cols.append(xp[:, i:i + (Ho - 1) * stride + 1:stride,
                              j:j + (Wo - 1) * stride + 1:stride, :])
    patches = jnp.stack(cols, axis=3)                      # (B, Ho, Wo, kh*kw, C)
    return patches.reshape(B * Ho * Wo, kh * kw * C), Ho, Wo


# ----------------------------------------------------------------------------
# Deterministic parameter construction (ResNet-style init, BN folded for inference)
# ----------------------------------------------------------------------------
class _Keys:
    def __init__(self, key):
        self._key, self._n = key, 0

    def __call__(self):
        self._n += 1
        return jax.random.fold_in(self._key, self._n)


def _conv_w(key, kh, kw, cin, cout):
    std = math.sqrt(2.0 / (kh * kw * cout))                # weight.normal_(0, sqrt(2/n))
    return std * jax.random.normal(key, (kh, kw, cin, cout), jnp.float32)


def _bn_fold(key, c, conv_bias=None, eps=1e-5):
    k1, k2 = jax.random.split(key)
    gamma = jnp.ones((c,), jnp.float32)
    beta = jnp.zeros((c,), jnp.float32)
    mean = 0.1 * jax.random.normal(k1, (c,), jnp.float32)
    var = 1.0 + 0.1 * jax.random.uniform(k2, (c,), jnp.float32)
    scale = gamma / jnp.sqrt(var + eps)
    bias = beta - mean * scale
    if conv_bias is not None:
        bias = bias + scale * conv_bias
    return scale.reshape(1, c), bias.reshape(1, c)


def _fold(w, scale):
    """Fold the per-output-channel BN scale into the weight and cast to bf16."""
    return (w * scale.reshape((1,) * (w.ndim - 1) + (-1,))).astype(jnp.bfloat16)


def make_params(key, num_head=2, num_class=8):
    kg = _Keys(key)
    P = {"num_head": num_head}

    # --- ResNet-50 trunk (FCL.base == VGGFACE2_DAN.features) ---
    w = _conv_w(kg(), 7, 7, 3, 64).reshape(49 * 3, 64)
    s, P["stem_b"] = _bn_fold(kg(), 64)
    P["stem_w"] = _fold(w, s)
    blocks = []
    inplanes = 64
    for planes, stride, nblocks in [(64, 1, 3), (128, 2, 4), (256, 2, 6), (512, 2, 3)]:
        for bi in range(nblocks):
            st = stride if bi == 0 else 1
            blk = {"stride": st}
            w1 = _conv_w(kg(), 1, 1, inplanes, planes).reshape(inplanes, planes)
            s1, blk["b1"] = _bn_fold(kg(), planes)
            blk["w1"] = _fold(w1, s1)
            w2 = _conv_w(kg(), 3, 3, planes, planes).reshape(9, planes, planes)
            s2, blk["b2"] = _bn_fold(kg(), planes)
            blk["w2"] = _fold(w2, s2)
            w3 = _conv_w(kg(), 1, 1, planes, planes * 4).reshape(planes, planes * 4)
            s3, blk["b3"] = _bn_fold(kg(), planes * 4)
            blk["w3"] = _fold(w3, s3)
            if bi == 0:                                     # 1x1/stride-s downsample + BN
                wd = _conv_w(kg(), 1, 1, inplanes, planes * 4).reshape(
                    inplanes, planes * 4)
                sd, blk["bd"] = _bn_fold(kg(), planes * 4)
                blk["wd"] = _fold(wd, sd)
            else:
                blk["wd"] = None
            blocks.append(blk)
            inplanes = planes * 4
    P["blocks"] = blocks

    # --- conv1x1_1 / conv1x1_2 (conv bias folded into BN bias, scale into weight) ---
    def conv1x1_bn(cin, cout):
        w_ = _conv_w(kg(), 1, 1, cin, cout).reshape(cin, cout)
        cb = 0.01 * jax.random.normal(kg(), (cout,), jnp.float32)
        s_, b_ = _bn_fold(kg(), cout, conv_bias=cb)
        return _fold(w_, s_), b_

    P["c11_w"], P["c11_b"] = conv1x1_bn(2048, 1024)
    P["c12_w"], P["c12_b"] = conv1x1_bn(1024, 512)

    # --- DAN heads (SpatialAttention + ChannelAttention; conv/linear biases init 0) ---
    sa_w1, sa_b1, sa_w9, sa_bias = [], [], [], []
    ca_w1, ca_b1, ca_w2, ca_b2 = [], [], [], []
    for _ in range(num_head):
        w1 = _conv_w(kg(), 1, 1, 512, 256).reshape(512, 256)
        s1, b1 = _bn_fold(kg(), 256)
        sa_w1.append(_fold(w1, s1))
        sa_b1.append(b1)
        w33 = _conv_w(kg(), 3, 3, 256, 512)
        w13 = _conv_w(kg(), 1, 3, 256, 512)
        w31 = _conv_w(kg(), 3, 1, 256, 512)
        s33, b33 = _bn_fold(kg(), 512)
        s13, b13 = _bn_fold(kg(), 512)
        s31, b31 = _bn_fold(kg(), 512)
        # Fold the three BN scales into the weights and merge conv3x3+conv1x3+conv3x1
        # into a single 9-tap filter bank (1x3 feeds row 1, 3x1 feeds column 1).
        w_eff = w33 * s33.reshape(1, 1, 1, 512)
        w_eff = w_eff.at[1, :, :, :].add(w13[0] * s13.reshape(1, 1, 512))
        w_eff = w_eff.at[:, 1, :, :].add(w31[:, 0] * s31.reshape(1, 1, 512))
        sa_w9.append(w_eff.reshape(9, 256, 512).astype(jnp.bfloat16))
        sa_bias.append(b33 + b13 + b31)
        cw1 = 0.001 * jax.random.normal(kg(), (512, 32), jnp.float32)
        cs1, cb1 = _bn_fold(kg(), 32)
        ca_w1.append(_fold(cw1, cs1))
        ca_b1.append(cb1)
        ca_w2.append((0.001 * jax.random.normal(kg(), (32, 512), jnp.float32)
                      ).astype(jnp.bfloat16))
        ca_b2.append(jnp.zeros((1, 512), jnp.float32))
    P["sa_w1_cat"] = jnp.concatenate(sa_w1, axis=1)           # (512, 256*nh)
    P["sa_b1_cat"] = jnp.concatenate(sa_b1, axis=1)           # (1, 256*nh)
    P["sa_w9_all"] = jnp.stack(sa_w9, axis=0)                 # (nh, 9, 256, 512)
    P["sa_bias_all"] = jnp.stack(sa_bias, axis=0)             # (nh, 1, 512)
    P["ca_w1_all"] = jnp.stack(ca_w1, axis=0)                 # (nh, 512, 32)
    P["ca_b1_all"] = jnp.stack(ca_b1, axis=0)                 # (nh, 1, 32)
    P["ca_w2_all"] = jnp.stack(ca_w2, axis=0)                 # (nh, 32, 512)
    P["ca_b2_all"] = jnp.stack(ca_b2, axis=0)                 # (nh, 1, 512)

    # --- final fc + BatchNorm1d (fc bias folded into BN bias, scale into weight) ---
    fc_w = (1.0 / math.sqrt(512)) * jax.random.normal(kg(), (512, num_class), jnp.float32)
    fc_b = 0.01 * jax.random.normal(kg(), (num_class,), jnp.float32)
    fc_s, P["fc_b"] = _bn_fold(kg(), num_class, conv_bias=fc_b)
    P["fc_w"] = _fold(fc_w, fc_s)
    return P


# ----------------------------------------------------------------------------
# Forward pass
# ----------------------------------------------------------------------------
def bottleneck_block(x, blk):
    """Bottleneck (spec variant): 1x1 stride-s /BN/ReLU -> 3x3/BN/ReLU -> 1x1/BN
    (+ shortcut, ReLU).  Downsample / identity shortcut fused into the last kernel."""
    B, H, W, Cin = x.shape
    s = blk["stride"]
    planes = blk["w1"].shape[1]
    xs = x[:, ::s, ::s, :] if s > 1 else x                  # 1x1 conv stride == subsample
    Ho, Wo = xs.shape[1], xs.shape[2]
    xs_flat = xs.reshape(B * Ho * Wo, Cin)

    y1 = matmul_bn(xs_flat, blk["w1"], blk["b1"], relu=True)
    y1 = y1.reshape(B, Ho, Wo, planes)

    if planes == 64:
        # layer1: Cin=Cout=64 -> tap-concatenated K=576 matmul (fills MXU depth,
        # output lands directly in compact layout, no junk-column slice needed).
        patches, _, _ = im2col(y1, 3, 3, 1, 1)
        y2_flat = matmul_bn(patches, blk["w2"].reshape(9 * planes, planes),
                            blk["b2"], relu=True)
    else:
        y2 = conv3x3_bn(y1, blk["w2"], blk["b2"], relu=True)
        y2_flat = y2.reshape(B * Ho * Wo, planes)

    if blk["wd"] is not None:                               # downsample fused in-kernel
        out = matmul_bn(y2_flat, blk["w3"], blk["b3"], relu=True,
                        ds=(xs_flat, blk["wd"], blk["bd"]))
    else:                                                   # identity shortcut fused
        out = matmul_bn(y2_flat, blk["w3"], blk["b3"], relu=True,
                        residual=x.reshape(B * H * W, Cin))
    return out.reshape(B, Ho, Wo, planes * 4)


def dan_heads(P, x512):
    """All CrossAttentionHeads, batched across heads."""
    B, H, W, C = x512.shape                                 # C == 512
    nh = P["num_head"]
    xf = x512.reshape(B * H * W, C)
    # all heads' SpatialAttention.conv1x1 (512 -> 256 each) in ONE matmul
    y_all = matmul_bn(xf, P["sa_w1_cat"], P["sa_b1_cat"], relu=False)
    y_all = y_all.reshape(B, H, W, nh * 256)
    gap = spatial_attention_gap(y_all, x512, P["sa_w9_all"], P["sa_bias_all"])
    ca = channel_attention(gap, P["ca_w1_all"], P["ca_b1_all"],
                           P["ca_w2_all"], P["ca_b2_all"])  # (nh, B, 512)
    return jnp.transpose(ca, (1, 0, 2))                     # (B, nh, 512)


def vggface2_dan_forward(P, x_nchw):
    """x: (B, 3, H, W) f32 -> (out (B,num_class), x_feat (B,512,H/32,W/32), heads)."""
    x = jnp.transpose(x_nchw, (0, 2, 3, 1)).astype(jnp.bfloat16)       # NHWC bf16
    B = x.shape[0]

    # --- ResNet-50 trunk ---
    p, Ho, Wo = im2col(x, 7, 7, 2, 3)
    x = matmul_bn(p, P["stem_w"], P["stem_b"], relu=True).reshape(B, Ho, Wo, 64)
    x = maxpool_3x3_s2_ceil(x)
    for blk in P["blocks"]:
        x = bottleneck_block(x, blk)

    # --- conv1x1_1 / conv1x1_2 ---
    B_, h, w, C = x.shape
    xf = x.reshape(B_ * h * w, C)
    xf = matmul_bn(xf, P["c11_w"], P["c11_b"], relu=True)
    xf = matmul_bn(xf, P["c12_w"], P["c12_b"], relu=True)
    x512 = xf.reshape(B_, h, w, 512)

    # --- DAN heads ---
    heads = dan_heads(P, x512)                                         # (B, nh, 512)

    # --- fc + BatchNorm1d on heads.sum(dim=1) ---
    out = matmul_bn(jnp.sum(heads, axis=1), P["fc_w"], P["fc_b"],
                    relu=False, out_dtype=jnp.float32)
    x_feat = jnp.transpose(x512, (0, 3, 1, 2)).astype(jnp.float32)
    return out, x_feat, heads


# ----------------------------------------------------------------------------
if __name__ == "__main__":
    NUM_HEAD, NUM_CLASS = 2, 8
    key = jax.random.PRNGKey(0)
    kp, kx = jax.random.split(key)
    params = make_params(kp, num_head=NUM_HEAD, num_class=NUM_CLASS)

    # small deterministic input: B=2, 3x64x64 -> trunk output (2, 2048, 2, 2)
    x = jax.random.normal(kx, (2, 3, 64, 64), jnp.float32)

    out, feat, heads = vggface2_dan_forward(params, x)
    out = jax.block_until_ready(out)
    feat = jax.block_until_ready(feat)
    heads = jax.block_until_ready(heads)

    assert out.shape == (2, NUM_CLASS), out.shape
    assert feat.shape == (2, 512, 2, 2), feat.shape
    assert heads.shape == (2, NUM_HEAD, 512), heads.shape
    assert bool(jnp.all(jnp.isfinite(out)))
    assert bool(jnp.all(jnp.isfinite(feat)))
    assert bool(jnp.all(jnp.isfinite(heads)))
    print("KERNEL_OK")
</pallas_src>

<mosaic_0001>
module attributes {stable_mosaic.version = 11 : i64} {
  func.func @_mm_bn_kernel(%arg0: i32, %arg1: memref<1024x147xbf16, #tpu.memory_space<vmem>>, %arg2: memref<147x64xbf16, #tpu.memory_space<vmem>>, %arg3: memref<1x64xf32, #tpu.memory_space<vmem>>, %arg4: memref<1024x64xbf16, #tpu.memory_space<vmem>>) attributes {dimension_semantics = [#tpu.dimension_semantics<parallel>], iteration_bounds = array<i64: 2>, scalar_prefetch = 0 : i64, scratch_operands = 0 : i64, tpu.core_type = #tpu.core_type<tc>, window_params = [{transform_indices = @transform_0, window_bounds = array<i64: 1024, 147>}, {pipeline_mode = #tpu.pipeline_mode<synchronous>, transform_indices = @transform_1, window_bounds = array<i64: 147, 64>}, {pipeline_mode = #tpu.pipeline_mode<synchronous>, transform_indices = @transform_2, window_bounds = array<i64: 1, 64>}, {transform_indices = @transform_3, window_bounds = array<i64: 1024, 64>}]} {
    %c0 = arith.constant 0 : index
    %c0_0 = arith.constant 0 : index
    %0 = vector.load %arg1[%c0, %c0_0] : memref<1024x147xbf16, #tpu.memory_space<vmem>>, vector<1024x147xbf16>
    %c0_1 = arith.constant 0 : index
    %c0_2 = arith.constant 0 : index
    %1 = vector.load %arg2[%c0_1, %c0_2] : memref<147x64xbf16, #tpu.memory_space<vmem>>, vector<147x64xbf16>
    %cst = arith.constant dense<0.000000e+00> : vector<1024x64xf32>
    %2 = tpu.matmul %0, %1, %cst {dimension_numbers = #tpu.dot_dimension_numbers<[1], [0], [0], [1], [0, 0, 1, 1], [], []>} : vector<1024x147xbf16>, vector<147x64xbf16>, vector<1024x64xf32> -> vector<1024x64xf32>
    %c0_3 = arith.constant 0 : index
    %c0_4 = arith.constant 0 : index
    %3 = vector.load %arg3[%c0_3, %c0_4] : memref<1x64xf32, #tpu.memory_space<vmem>>, vector<1x64xf32>
    %4 = vector.broadcast %3 : vector<1x64xf32> to vector<1024x64xf32>
    %5 = arith.addf %2, %4 : vector<1024x64xf32>
    %cst_5 = arith.constant 0.000000e+00 : f32
    %6 = vector.broadcast %cst_5 : f32 to vector<1024x64xf32>
    %7 = arith.maximumf %5, %6 : vector<1024x64xf32>
    %8 = arith.truncf %7 : vector<1024x64xf32> to vector<1024x64xbf16>
    %c0_6 = arith.constant 0 : index
    %c0_7 = arith.constant 0 : index
    %9 = vector.load %arg4[%c0_6, %c0_7] : memref<1024x64xbf16, #tpu.memory_space<vmem>>, vector<1024x64xbf16>
    tpu.vector_store %arg4[%c0_6, %c0_7], %8 {strides = array<i32>} : memref<1024x64xbf16, #tpu.memory_space<vmem>>, vector<1024x64xbf16>,
    return
  }
  func.func @transform_0(%arg0: i32) -> (i32, i32) {
    %c0_i32 = arith.constant 0 : i32
    %c0_i32_0 = arith.constant 0 : i32
    return %arg0, %c0_i32 : i32, i32
  }
  func.func @transform_1(%arg0: i32) -> (i32, i32) {
    %c0_i32 = arith.constant 0 : i32
    %c0_i32_0 = arith.constant 0 : i32
    %c0_i32_1 = arith.constant 0 : i32
    return %c0_i32, %c0_i32_0 : i32, i32
  }
  func.func @transform_2(%arg0: i32) -> (i32, i32) {
    %c0_i32 = arith.constant 0 : i32
    %c0_i32_0 = arith.constant 0 : i32
    %c0_i32_1 = arith.constant 0 : i32
    return %c0_i32, %c0_i32_0 : i32, i32
  }
  func.func @transform_3(%arg0: i32) -> (i32, i32) {
    %c0_i32 = arith.constant 0 : i32
    %c0_i32_0 = arith.constant 0 : i32
    return %arg0, %c0_i32 : i32, i32
  }
}

</mosaic_0001>

<bundles_post_ra>
// kernel: tpu_custom_call.1
= control target key start
LH: loop header
LB: loop body
LE: loop exit
PB: predicated region body
PF: predicated region fallthrough
CT: control target
= control target key end

     0   :  { %s3074_s12 = smov 0   ;;  %s3995_s0 = inlined_call_operand.vmem [shape: bf16[2048,147], index: 0, kind: input, shape index: {}]   ;;  %s3996_s1 = inlined_call_operand.vmem [shape: bf16[147,64], index: 1, kind: input, shape index: {}]   ;;  %s3997_s2 = inlined_call_operand.vmem [shape: f32[1,64], index: 2, kind: input, shape index: {}]   ;;  %s3998_s3 = inlined_call_operand.vmem [shape: bf16[2048,64], index: 3, kind: output, shape index: {}]  }
   0x1 LB: > { %s2261_s13 = sadd.s32 4294967295, %s3051_s12   ;;  %p2265_p0 = scmp.ge.s32.totalorder %s3051_s12, 1  ;;  %s3051_s12 = sphi %s3074_s12, %s13_s12  }
   0x2   : > { %p139_p1 = scmp.lt.s32.totalorder %s3051_s12, 3 }
   0x4   : > { %p140_p2 = pnand %p2265_p0, %p139_p1 }
   0x5   : > { %s2266_s18 = sshll.u32 (!%p140_p2), %s2261_s13, 7 }
   0x6   : > { %143 = sbr.rel (%p140_p2) target bundleno = 688 (0x2b0), region = 32  ;;  %p165_p3 = scmp.lt.s32.totalorder (!%p140_p2), %s2266_s18, 255 }
   0xb   : > { %v3021_v0 = vld [vmem:[%s3996_s1 + $0x38] sm:$0xff]  ;;  %v324_v1 = vld [vmem:[%s3996_s1 + $0x48] sm:$0x3]  ;;  %vm1155_vm0 = vcmask 1040384   ;;  %vm1156_vm1 = vcmask 1041408   ;;  %v3020_v3 = vld [vmem:[%s3996_s1 + $0x30] sm:$0xff] }
   0xc   : > { %v942_v2 = vunpack.c.l.b16 %v324_v1  ;;  %1162 = vmatpush.bf16.msra.mxu0 %v3021_v0  ;;  %3023 = vmatpush.bf16.msra.mxu2 %v3021_v0  ;;  %v3053_v4 = vmov 65535   ;;  %s4000_s18 = smov (!%p165_p3, %s2266_s18), 255  ;;  %v3019_v9 = vld [vmem:[%s3996_s1 + $0x28] sm:$0xff]  ;;  %v3022_v10 = vld [vmem:[%s3996_s1 + $0x40] sm:$0xff]  ;;  %vm962_vm2 = vcmask 154624   ;;  %v3017_v18 = vld [vmem:[%s3996_s1 + $0x18] sm:$0xff] }
   0xd   : > { %v1157_v5 = vsel %vm1155_vm0, 4294967295, %v3053_v4  ;;  %s2885_s23 = sshll.u32 %s4000_s18, 3  ;;  %v3018_v14 = vld [vmem:[%s3996_s1 + $0x20] sm:$0xff]  ;;  %v3016_v19 = vld [vmem:[%s3996_s1 + $0x10] sm:$0xff]  ;;  %v3015_v20 = vld [vmem:[%s3996_s1 + $0x8] sm:$0xff]  ;;  %s2270_s15 = sshll.u32 %s4000_s18, 2 }
   0xe   : > { %v952_v6 = vpack.c.b16 %v942_v2, %v942_v2  ;;  %v1158_v7 = vsel %vm1156_vm1, %v1157_v5, 0  ;;  %s3103_s28 = scalar_lea.vmem %s3995_s0, %s2885_s23  ;;  %v3014_v26 = vld [vmem:[%s3996_s1] sm:$0xff]  ;;  %s3232_s19 = scalar_lea.vmem %s3998_s3, %s2270_s15  ;;  %vm2076_vm3 = vcmask 519168  }
   0xf   : > { %v2886_v11 = vld [vmem:[%s3103_s28 + $0x4] sm:$0xf]  ;;  %v2275_v12 = vld [vmem:[%s3103_s28 + $0x8] sm:$0xf0]  ;;  %v2952_v15 = vld [vmem:[%s3103_s28 + $0x214] sm:$0xf] }
  0x10   : > { %v1160_v8 = vand.u32 %v1158_v7, %v952_v6  ;;  %1163 = vmatpush.bf16.msra.mxu0 %v3020_v3  ;;  %3024 = vmatpush.bf16.msra.mxu2 %v3020_v3  ;;  %v2278_v13 = vor.u32 %v2886_v11, %v2275_v12  ;;  %v2539_v16 = vld [vmem:[%s3103_s28 + $0x218] sm:$0xf0]  ;;  %v2888_v21 = vld [vmem:[%s3103_s28 + $0x14] sm:$0xf]  ;;  %v2954_v23 = vld [vmem:[%s3103_s28 + $0x224] sm:$0xf] }
  0x11   : > { %v2542_v17 = vor.u32 %v2952_v15, %v2539_v16  ;;  %v2283_v22 = vld [vmem:[%s3103_s28 + $0x18] sm:$0xf0]  ;;  %v2547_v24 = vld [vmem:[%s3103_s28 + $0x228] sm:$0xf0]  ;;  %v2273_v27 = vld [vmem:[%s3103_s28] sm:$0xf] }
  0x12   : > { %1497 = vmatpush.bf16.msra.mxu1 %v1160_v8  ;;  %3031 = vmatpush.bf16.msra.mxu3 %v1160_v8  ;;  %v2286_v25 = vor.u32 %v2888_v21, %v2283_v22  ;;  %v2887_v28 = vld [vmem:[%s3103_s28 + $0x4] sm:$0xf0]  ;;  %v2529_v29 = vld [vmem:[%s3103_s28 + $0x200] sm:$0xf]  ;;  %v2550_v31 = vor.u32 %v2954_v23, %v2547_v24  ;;  %v2890_v34 = vld [vmem:[%s3103_s28 + $0x24] sm:$0xf] }
  0x13   : > { %v2951_v30 = vld [vmem:[%s3103_s28 + $0x204] sm:$0xf0]  ;;  %v2274_v32 = vor.u32 %v2887_v28, %v2273_v27  ;;  %v2291_v35 = vld [vmem:[%s3103_s28 + $0x28] sm:$0xf0]  ;;  %v2956_v36 = vld [vmem:[%s3103_s28 + $0x234] sm:$0xf] }
  0x14   : > { %1164 = vmatpush.bf16.msra.mxu0 %v3019_v9  ;;  %3025 = vmatpush.bf16.msra.mxu2 %v3019_v9  ;;  %v2530_v33 = vor.u32 %v2951_v30, %v2529_v29  ;;  %v2555_v37 = vld [vmem:[%s3103_s28 + $0x238] sm:$0xf0]  ;;  %v2294_v38 = vor.u32 %v2890_v34, %v2291_v35  ;;  %v2281_v39 = vld [vmem:[%s3103_s28 + $0x10] sm:$0xf]  ;;  %v2889_v40 = vld [vmem:[%s3103_s28 + $0x14] sm:$0xf0] }
  0x15   : > { %v2537_v41 = vld [vmem:[%s3103_s28 + $0x210] sm:$0xf]  ;;  %v2953_v42 = vld [vmem:[%s3103_s28 + $0x214] sm:$0xf0]  ;;  %v2558_v43 = vor.u32 %v2956_v36, %v2555_v37  ;;  %v2282_v44 = vor.u32 %v2889_v40, %v2281_v39  ;;  %v2892_v46 = vld [vmem:[%s3103_s28 + $0x34] sm:$0xf] }
  0x16   : > { %1498 = vmatpush.bf16.msra.mxu1 %v3022_v10  ;;  %3032 = vmatpush.bf16.msra.mxu3 %v3022_v10  ;;  %v2538_v45 = vor.u32 %v2953_v42, %v2537_v41  ;;  %v2299_v47 = vld [vmem:[%s3103_s28 + $0x38] sm:$0xf0]  ;;  %v2958_v48 = vld [vmem:[%s3103_s28 + $0x244] sm:$0xf]  ;;  %v2563_v49 = vld [vmem:[%s3103_s28 + $0x248] sm:$0xf0] }
  0x17   : > { %v2302_v50 = vor.u32 %v2892_v46, %v2299_v47  ;;  %v2289_v51 = vld [vmem:[%s3103_s28 + $0x20] sm:$0xf]  ;;  %v2891_v52 = vld [vmem:[%s3103_s28 + $0x24] sm:$0xf0]  ;;  %v2566_v55 = vor.u32 %v2958_v48, %v2563_v49  ;;  %v2894_v58 = vld [vmem:[%s3103_s28 + $0x44] sm:$0xf] }
  0x18   : > { %1165 = vmatpush.bf16.msra.mxu0 %v3018_v14  ;;  %3026 = vmatpush.bf16.msra.mxu2 %v3018_v14  ;;  %v2545_v53 = vld [vmem:[%s3103_s28 + $0x220] sm:$0xf]  ;;  %v2955_v54 = vld [vmem:[%s3103_s28 + $0x224] sm:$0xf0]  ;;  %v2290_v56 = vor.u32 %v2891_v52, %v2289_v51  ;;  %v2307_v59 = vld [vmem:[%s3103_s28 + $0x48] sm:$0xf0] }
  0x19   : > { %2819 = vmatmul.msk.bf16.vlgmr.msra.gmra.mxu1 %vm962_vm2, %v2278_v13  ;;  %2852 = vmatmul.msk.bf16.vlgmr.msra.gmra.mxu3 %vm962_vm2, %v2542_v17  ;;  %v2546_v57 = vor.u32 %v2955_v54, %v2545_v53  ;;  %v2960_v60 = vld [vmem:[%s3103_s28 + $0x254] sm:$0xf]  ;;  %v2571_v61 = vld [vmem:[%s3103_s28 + $0x258] sm:$0xf0]  ;;  %v2310_v62 = vor.u32 %v2894_v58, %v2307_v59  ;;  %v2297_v63 = vld [vmem:[%s3103_s28 + $0x30] sm:$0xf] }
  0x1a   : > { %v2893_v0 = vld [vmem:[%s3103_s28 + $0x34] sm:$0xf0]  ;;  %v2553_v1 = vld [vmem:[%s3103_s28 + $0x230] sm:$0xf]  ;;  %v2574_v3 = vor.u32 %v2960_v60, %v2571_v61  ;;  %v2896_v6 = vld [vmem:[%s3103_s28 + $0x54] sm:$0xf] }
  0x1b   : > { %v2957_v2 = vld [vmem:[%s3103_s28 + $0x234] sm:$0xf0]  ;;  %v2298_v4 = vor.u32 %v2893_v0, %v2297_v63  ;;  %v2315_v7 = vld [vmem:[%s3103_s28 + $0x58] sm:$0xf0]  ;;  %v2962_v8 = vld [vmem:[%s3103_s28 + $0x264] sm:$0xf] }
  0x1c   : > { %1166 = vmatpush.bf16.msra.mxu0 %v3017_v18  ;;  %3027 = vmatpush.bf16.msra.mxu2 %v3017_v18  ;;  %v2554_v5 = vor.u32 %v2957_v2, %v2553_v1  ;;  %v2579_v9 = vld [vmem:[%s3103_s28 + $0x268] sm:$0xf0]  ;;  %v2318_v10 = vor.u32 %v2896_v6, %v2315_v7  ;;  %v2305_v11 = vld [vmem:[%s3103_s28 + $0x40] sm:$0xf]  ;;  %v2895_v12 = vld [vmem:[%s3103_s28 + $0x44] sm:$0xf0] }
  0x1d   : > { %v2561_v13 = vld [vmem:[%s3103_s28 + $0x240] sm:$0xf]  ;;  %v2959_v14 = vld [vmem:[%s3103_s28 + $0x244] sm:$0xf0]  ;;  %v2582_v15 = vor.u32 %v2962_v8, %v2579_v9  ;;  %v2306_v16 = vor.u32 %v2895_v12, %v2305_v11  ;;  %v2898_v18 = vld [vmem:[%s3103_s28 + $0x64] sm:$0xf] }
  0x1e   : > { %v2562_v17 = vor.u32 %v2959_v14, %v2561_v13  ;;  %v2587_v21 = vld [vmem:[%s3103_s28 + $0x278] sm:$0xf0]  ;;  %v2313_v23 = vld [vmem:[%s3103_s28 + $0x50] sm:$0xf]  ;;  %v2897_v24 = vld [vmem:[%s3103_s28 + $0x54] sm:$0xf0] }
  0x1f   : > { %v2314_v28 = vor.u32 %v2897_v24, %v2313_v23  ;;  %v2900_v30 = vld [vmem:[%s3103_s28 + $0x74] sm:$0xf]  ;;  %v2321_v35 = vld [vmem:[%s3103_s28 + $0x60] sm:$0xf]  ;;  %v2899_v36 = vld [vmem:[%s3103_s28 + $0x64] sm:$0xf0] }
  0x20   : > { %1167 = vmatpush.bf16.msra.mxu0 %v3016_v19  ;;  %3028 = vmatpush.bf16.msra.mxu2 %v3016_v19  ;;  %v2323_v19 = vld [vmem:[%s3103_s28 + $0x68] sm:$0xf0]  ;;  %v2577_v37 = vld [vmem:[%s3103_s28 + $0x260] sm:$0xf]  ;;  %v2322_v40 = vor.u32 %v2899_v36, %v2321_v35  ;;  %v2902_v42 = vld [vmem:[%s3103_s28 + $0x84] sm:$0xf] }
  0x21   : > { %v2326_v22 = vor.u32 %v2898_v18, %v2323_v19  ;;  %v2329_v47 = vld [vmem:[%s3103_s28 + $0x70] sm:$0xf]  ;;  %v2901_v48 = vld [vmem:[%s3103_s28 + $0x74] sm:$0xf0]  ;;  %v2347_v58 = vld [vmem:[%s3103_s28 + $0x98] sm:$0xf0] }
  0x22   : > { %v2965_v51 = vld [vmem:[%s3103_s28 + $0x274] sm:$0xf0]  ;;  %v2330_v53 = vor.u32 %v2901_v48, %v2329_v47  ;;  %v2970_v59 = vld [vmem:[%s3103_s28 + $0x2a4] sm:$0xf]  ;;  %v2611_v60 = vld [vmem:[%s3103_s28 + $0x2a8] sm:$0xf0] }
  0x23   : > { %v2903_v63 = vld [vmem:[%s3103_s28 + $0x84] sm:$0xf0]  ;;  %v3219_v2 = vld [vmem:[%s3997_s2] ss:$0 sm:$0xff]  ;;  %v2906_v18 = vld [vmem:[%s3103_s28 + $0xa4] sm:$0xf] }
  0x24   : > { %1168 = vmatpush.bf16.msra.mxu0 %v3015_v20  ;;  %3029 = vmatpush.bf16.msra.mxu2 %v3015_v20  ;;  %v2964_v20 = vld [vmem:[%s3103_s28 + $0x274] sm:$0xf]  ;;  %v2355_v19 = vld [vmem:[%s3103_s28 + $0xa8] sm:$0xf0]  ;;  %v2345_v24 = vld [vmem:[%s3103_s28 + $0x90] sm:$0xf] }
  0x25   : > { %v2590_v27 = vor.u32 %v2964_v20, %v2587_v21  ;;  %v2972_v21 = vld [vmem:[%s3103_s28 + $0x2b4] sm:$0xf]  ;;  %v2358_v23 = vor.u32 %v2906_v18, %v2355_v19  ;;  %v2363_v48 = vld [vmem:[%s3103_s28 + $0xb8] sm:$0xf0] }
  0x26   : > { %v2908_v47 = vld [vmem:[%s3103_s28 + $0xb4] sm:$0xf] }
  0x28   : > { %1169 = vmatpush.bf16.msra.mxu0 %v3014_v26  ;;  %3030 = vmatpush.bf16.msra.mxu2 %v3014_v26  ;;  %v2961_v26 = vld [vmem:[%s3103_s28 + $0x254] sm:$0xf0] }
  0x29   : > { %2820 = vmatmul.msk.bf16.gmra.mxu1 %vm962_vm2, %v2286_v25  ;;  %2853 = vmatmul.msk.bf16.gmra.mxu3 %vm962_vm2, %v2550_v31  ;;  %v2569_v25 = vld [vmem:[%s3103_s28 + $0x250] sm:$0xf]  ;;  %v2331_v31 = vld [vmem:[%s3103_s28 + $0x78] sm:$0xf0] }
  0x2a   : > { %v2570_v29 = vor.u32 %v2961_v26, %v2569_v25  ;;  %v2334_v34 = vor.u32 %v2900_v30, %v2331_v31  ;;  %v2905_v25 = vld [vmem:[%s3103_s28 + $0x94] sm:$0xf0] }
  0x2b   : > { %1170 = vmatmul.bf16.vlgmr.msra.gmra.mxu0 %v2274_v32  ;;  %1330 = vmatmul.bf16.vlgmr.msra.gmra.mxu2 %v2530_v33  ;;  %v2966_v32 = vld [vmem:[%s3103_s28 + $0x284] sm:$0xf]  ;;  %v2595_v33 = vld [vmem:[%s3103_s28 + $0x288] sm:$0xf0]  ;;  %v2969_v30 = vld [vmem:[%s3103_s28 + $0x294] sm:$0xf0] }
  0x2c   : > { %v2598_v39 = vor.u32 %v2966_v32, %v2595_v33 }
  0x39   : > { %2821 = vmatmul.msk.bf16.gmra.mxu1 %vm962_vm2, %v2294_v38  ;;  %2854 = vmatmul.msk.bf16.gmra.mxu3 %vm962_vm2, %v2558_v43  ;;  %v2963_v38 = vld [vmem:[%s3103_s28 + $0x264] sm:$0xf0]  ;;  %v2339_v43 = vld [vmem:[%s3103_s28 + $0x88] sm:$0xf0] }
  0x3a   : > { %v2578_v41 = vor.u32 %v2963_v38, %v2577_v37  ;;  %v2342_v46 = vor.u32 %v2902_v42, %v2339_v43 }
  0x3b   : > { %1175 = vmatmul.bf16.gmra.mxu0 %v2282_v44  ;;  %1335 = vmatmul.bf16.gmra.mxu2 %v2538_v45  ;;  %v2968_v44 = vld [vmem:[%s3103_s28 + $0x294] sm:$0xf]  ;;  %v2603_v45 = vld [vmem:[%s3103_s28 + $0x298] sm:$0xf0] }
  0x3c   : > { %v2606_v52 = vor.u32 %v2968_v44, %v2603_v45 }
  0x49   : > { %2822 = vmatmul.msk.bf16.gmra.mxu1 %vm962_vm2, %v2302_v50  ;;  %2855 = vmatmul.msk.bf16.gmra.mxu3 %vm962_vm2, %v2566_v55  ;;  %v2585_v50 = vld [vmem:[%s3103_s28 + $0x270] sm:$0xf] }
  0x4a   : > { %v2586_v54 = vor.u32 %v2965_v51, %v2585_v50  ;;  %v2974_v51 = vld [vmem:[%s3103_s28 + $0x2c4] sm:$0xf] }
  0x4b   : > { %1180 = vmatmul.bf16.gmra.mxu0 %v2290_v56  ;;  %1340 = vmatmul.bf16.gmra.mxu2 %v2546_v57  ;;  %v2904_v57 = vld [vmem:[%s3103_s28 + $0x94] sm:$0xf] }
  0x4c   : > { %v2350_v61 = vor.u32 %v2904_v57, %v2347_v58  ;;  %v2907_v57 = vld [vmem:[%s3103_s28 + $0xa4] sm:$0xf0] }
  0x59   : > { %2823 = vmatmul.msk.bf16.gmra.mxu1 %vm962_vm2, %v2310_v62  ;;  %2856 = vmatmul.msk.bf16.gmra.mxu3 %vm962_vm2, %v2574_v3  ;;  %v2337_v62 = vld [vmem:[%s3103_s28 + $0x80] sm:$0xf] }
  0x5a   : > { %v2593_v3 = vld [vmem:[%s3103_s28 + $0x280] sm:$0xf]  ;;  %v2338_v6 = vor.u32 %v2903_v63, %v2337_v62  ;;  %v2971_v62 = vld [vmem:[%s3103_s28 + $0x2a4] sm:$0xf0] }
  0x5b   : > { %1185 = vmatmul.bf16.gmra.mxu0 %v2298_v4  ;;  %1345 = vmatmul.bf16.gmra.mxu2 %v2554_v5  ;;  %v2967_v4 = vld [vmem:[%s3103_s28 + $0x284] sm:$0xf0]  ;;  %v2614_v5 = vor.u32 %v2970_v59, %v2611_v60 }
  0x5c   : > { %v2594_v8 = vor.u32 %v2967_v4, %v2593_v3 }
  0x69   : > { %2824 = vmatmul.msk.bf16.gmra.mxu1 %vm962_vm2, %v2318_v10  ;;  %2857 = vmatmul.msk.bf16.gmra.mxu3 %vm962_vm2, %v2582_v15 }
  0x6b   : > { %1190 = vmatmul.bf16.gmra.mxu0 %v2306_v16  ;;  %1350 = vmatmul.bf16.gmra.mxu2 %v2562_v17 }
  0x79   : > { %2825 = vmatmul.msk.bf16.gmra.mxu1 %vm962_vm2, %v2326_v22  ;;  %2858 = vmatmul.msk.bf16.gmra.mxu3 %vm962_vm2, %v2590_v27  ;;  %v2619_v22 = vld [vmem:[%s3103_s28 + $0x2b8] sm:$0xf0] }
  0x7a   : > { %v2622_v31 = vor.u32 %v2972_v21, %v2619_v22  ;;  %v2910_v22 = vld [vmem:[%s3103_s28 + $0xc4] sm:$0xf] }
  0x7b   : > { %1195 = vmatmul.bf16.gmra.mxu0 %v2314_v28  ;;  %1355 = vmatmul.bf16.gmra.mxu2 %v2570_v29  ;;  %v2601_v29 = vld [vmem:[%s3103_s28 + $0x290] sm:$0xf] }
  0x7c   : > { %v2602_v36 = vor.u32 %v2969_v30, %v2601_v29 }
  0x89   : > { %2826 = vmatmul.msk.bf16.gmra.mxu1 %vm962_vm2, %v2334_v34  ;;  %2859 = vmatmul.msk.bf16.gmra.mxu3 %vm962_vm2, %v2598_v39  ;;  %v2346_v34 = vor.u32 %v2905_v25, %v2345_v24 }
  0x8b   : > { %1200 = vmatmul.bf16.gmra.mxu0 %v2322_v40  ;;  %1360 = vmatmul.bf16.gmra.mxu2 %v2578_v41 }
  0x96   : > { %v1500_v49 = vpop.f32.mrf.mxu1 }
  0x99   : > { %2827 = vmatmul.msk.bf16.gmra.mxu1 %vm962_vm2, %v2342_v46  ;;  %2860 = vmatmul.msk.bf16.gmra.mxu3 %vm962_vm2, %v2606_v52  ;;  %v2627_v52 = vld [vmem:[%s3103_s28 + $0x2c8] sm:$0xf0] }
  0x9a   : > { %v2630_v63 = vor.u32 %v2974_v51, %v2627_v52 }
  0x9b   : > { %1205 = vmatmul.bf16.gmra.mxu0 %v2330_v53  ;;  %1365 = vmatmul.bf16.gmra.mxu2 %v2586_v54  ;;  %v2366_v54 = vor.u32 %v2908_v47, %v2363_v48 }
  0x9c   : > { %v3206_v55 = vpop.f32.mrf.mxu3 }
  0x9e   : > { %v1502_v56 = vpop.f32.mrf.mxu1 }
  0xa4   : > { %v3214_v0 = vpop.f32.mrf.mxu3 }
  0xa6   : > { %v1505_v1 = vpop.f32.mrf.mxu1 }
  0xa8   : > { %v1171_v7 = vpop.f32.mrf.mxu0 }
  0xa9   : > { %2828 = vmatmul.msk.bf16.gmra.mxu1 %vm962_vm2, %v2350_v61  ;;  %v1172_v9 = vadd.f32 %v3219_v2, %v1171_v7  ;;  %2861 = vmatmul.msk.bf16.gmra.mxu3 %vm962_vm2, %v2614_v5  ;;  %v2609_v61 = vld [vmem:[%s3103_s28 + $0x2a0] sm:$0xf] }
  0xaa   : > { %v2610_v7 = vor.u32 %v2971_v62, %v2609_v61  ;;  %v2912_v61 = vld [vmem:[%s3103_s28 + $0xd4] sm:$0xf]  ;;  %v2379_v62 = vld [vmem:[%s3103_s28 + $0xd8] sm:$0xf0] }
  0xab   : > { %v1501_v10 = vadd.f32 %v1500_v49, %v1172_v9  ;;  %1210 = vmatmul.bf16.gmra.mxu0 %v2338_v6  ;;  %1370 = vmatmul.bf16.gmra.mxu2 %v2594_v8 }
  0xac   : > { %v3227_v11 = vpop.f32.mrf.mxu3 }
  0xad   : > { %v1820_v12 = vmax.f32 %v1501_v10, 0.0 }
  0xae   : > { %v1507_v13 = vpop.f32.mrf.mxu1  ;;  %v3234_v15 = vpop.f32.mrf.mxu2 }
  0xaf   : > { %v1948_v14 = vpack.c.bf16 %v1820_v12, %v1820_v12 }
  0xb0   : > { %v1173_v16 = vpop.f32.mrf.mxu0 }
  0xb1   : > { %2077 = vst.msk [vmem:[%s3232_s19] sm:$0xf] %vm2076_vm3, %v1948_v14  ;;  %v1174_v17 = vadd.f32 %v3219_v2, %v1173_v16 }
  0xb3   : > { %v1503_v20 = vadd.f32 %v1502_v56, %v1174_v17  ;;  %v2353_v56 = vld [vmem:[%s3103_s28 + $0xa0] sm:$0xf] }
  0xb4   : > { %v3245_v26 = vpop.f32.mrf.mxu3 }
  0xb5   : > { %v1821_v27 = vmax.f32 %v1503_v20, 0.0 }
  0xb6   : > { %v1510_v28 = vpop.f32.mrf.mxu1  ;;  %v3249_v33 = vpop.f32.mrf.mxu2 }
  0xb7   : > { %v1949_v32 = vpack.c.bf16 %v1821_v27, %v1821_v27  ;;  %v2976_v27 = vld [vmem:[%s3103_s28 + $0x2d4] sm:$0xf] }
  0xb8   : > { %v1176_v35 = vpop.f32.mrf.mxu0 }
  0xb9   : > { %2829 = vmatmul.msk.bf16.gmra.mxu1 %vm962_vm2, %v2358_v23  ;;  %2078 = vst.msk [vmem:[%s3232_s19 + $0x4] sm:$0xf] %vm2076_vm3, %v1949_v32  ;;  %v1177_v37 = vadd.f32 %v3219_v2, %v1176_v35  ;;  %2862 = vmatmul.msk.bf16.gmra.mxu3 %vm962_vm2, %v2622_v31  ;;  %v2371_v23 = vld [vmem:[%s3103_s28 + $0xc8] sm:$0xf0]  ;;  %v2361_v31 = vld [vmem:[%s3103_s28 + $0xb0] sm:$0xf] }
  0xba   : > { %v2374_v30 = vor.u32 %v2910_v22, %v2371_v23  ;;  %v2909_v32 = vld [vmem:[%s3103_s28 + $0xb4] sm:$0xf0] }
  0xbb   : > { %v1506_v38 = vadd.f32 %v1505_v1, %v1177_v37  ;;  %1215 = vmatmul.bf16.gmra.mxu0 %v2346_v34  ;;  %1375 = vmatmul.bf16.gmra.mxu2 %v2602_v36  ;;  %v2617_v37 = vld [vmem:[%s3103_s28 + $0x2b0] sm:$0xf] }
  0xbc   : > { %v3256_v39 = vpop.f32.mrf.mxu3 }
  0xbd   : > { %v1822_v40 = vmax.f32 %v1506_v38, 0.0  ;;  %v2973_v38 = vld [vmem:[%s3103_s28 + $0x2b4] sm:$0xf0] }
  0xbe   : > { %v1512_v41 = vpop.f32.mrf.mxu1  ;;  %v1336_v43 = vpop.f32.mrf.mxu2 }
  0xbf   : > { %v1950_v42 = vpack.c.bf16 %v1822_v40, %v1822_v40  ;;  %v1337_v44 = vadd.f32 %v3219_v2, %v1336_v43 }
  0xc0   : > { %v1178_v45 = vpop.f32.mrf.mxu0 }
  0xc1   : > { %2079 = vst.msk [vmem:[%s3232_s19 + $0x8] sm:$0xf] %vm2076_vm3, %v1950_v42  ;;  %v1179_v46 = vadd.f32 %v3219_v2, %v1178_v45  ;;  %v1666_v49 = vadd.f32 %v3206_v55, %v1337_v44  ;;  %v2354_v55 = vor.u32 %v2907_v57, %v2353_v56 }
  0xc3   : > { %v1508_v50 = vadd.f32 %v1507_v13, %v1179_v46  ;;  %v1886_v53 = vmax.f32 %v1666_v49, 0.0  ;;  %v2618_v46 = vor.u32 %v2973_v38, %v2617_v37  ;;  %v2914_v37 = vld [vmem:[%s3103_s28 + $0xe4] sm:$0xf]  ;;  %v2387_v38 = vld [vmem:[%s3103_s28 + $0xe8] sm:$0xf0] }
  0xc4   : > { %v3269_v58 = vpop.f32.mrf.mxu3 }
  0xc5   : > { %v1823_v59 = vmax.f32 %v1508_v50, 0.0  ;;  %v2014_v1 = vpack.c.bf16 %v1886_v53, %v1886_v53 }
  0xc6   : > { %v1515_v60 = vpop.f32.mrf.mxu1  ;;  %v1338_v4 = vpop.f32.mrf.mxu2 }
  0xc7   : > { %v1951_v3 = vpack.c.bf16 %v1823_v59, %v1823_v59  ;;  %2143 = vst.msk [vmem:[%s3232_s19 + $0x108] sm:$0xf] %vm2076_vm3, %v2014_v1  ;;  %v1339_v5 = vadd.f32 %v3219_v2, %v1338_v4  ;;  %v2643_v4 = vld [vmem:[%s3103_s28 + $0x2e8] sm:$0xf0] }
  0xc8   : > { %v1181_v6 = vpop.f32.mrf.mxu0 }
  0xc9   : > { %2830 = vmatmul.msk.bf16.gmra.mxu1 %vm962_vm2, %v2366_v54  ;;  %2080 = vst.msk [vmem:[%s3232_s19 + $0xc] sm:$0xf] %vm2076_vm3, %v1951_v3  ;;  %v1182_v8 = vadd.f32 %v3219_v2, %v1181_v6  ;;  %2863 = vmatmul.msk.bf16.gmra.mxu3 %vm962_vm2, %v2630_v63  ;;  %v1668_v9 = vadd.f32 %v3214_v0, %v1339_v5  ;;  %v2978_v3 = vld [vmem:[%s3103_s28 + $0x2e4] sm:$0xf]  ;;  %v2369_v6 = vld [vmem:[%s3103_s28 + $0xc0] sm:$0xf] }
  0xca   : > { %v2382_v5 = vor.u32 %v2912_v61, %v2379_v62 }
  0xcb   : > { %v1511_v10 = vadd.f32 %v1510_v28, %v1182_v8  ;;  %1220 = vmatmul.bf16.gmra.mxu0 %v2354_v55  ;;  %v1887_v12 = vmax.f32 %v1668_v9, 0.0  ;;  %1380 = vmatmul.bf16.gmra.mxu2 %v2610_v7  ;;  %v2635_v28 = vld [vmem:[%s3103_s28 + $0x2d8] sm:$0xf0]  ;;  %v2911_v7 = vld [vmem:[%s3103_s28 + $0xc4] sm:$0xf0] }
  0xcc   : > { %v3282_v13 = vpop.f32.mrf.mxu3  ;;  %v2638_v40 = vor.u32 %v2976_v27, %v2635_v28 }
  0xcd   : > { %v1824_v14 = vmax.f32 %v1511_v10, 0.0  ;;  %v2015_v17 = vpack.c.bf16 %v1887_v12, %v1887_v12  ;;  %v2625_v12 = vld [vmem:[%s3103_s28 + $0x2c0] sm:$0xf] }
  0xce   : > { %v1517_v16 = vpop.f32.mrf.mxu1  ;;  %v1341_v19 = vpop.f32.mrf.mxu2 }
  0xcf   : > { %v1952_v18 = vpack.c.bf16 %v1824_v14, %v1824_v14  ;;  %2144 = vst.msk [vmem:[%s3232_s19 + $0x10c] sm:$0xf] %vm2076_vm3, %v2015_v17  ;;  %v1342_v0 = vadd.f32 %v3219_v2, %v1341_v19  ;;  %v2975_v14 = vld [vmem:[%s3103_s28 + $0x2c4] sm:$0xf0]  ;;  %v2646_v17 = vor.u32 %v2978_v3, %v2643_v4 }
  0xd0   : > { %v1183_v20 = vpop.f32.mrf.mxu0 }
  0xd1   : > { %2081 = vst.msk [vmem:[%s3232_s19 + $0x10] sm:$0xf] %vm2076_vm3, %v1952_v18  ;;  %v1184_v21 = vadd.f32 %v3219_v2, %v1183_v20  ;;  %v1671_v24 = vadd.f32 %v3227_v11, %v1342_v0  ;;  %v2362_v11 = vor.u32 %v2909_v32, %v2361_v31 }
  0xd3   : > { %v1513_v25 = vadd.f32 %v1512_v41, %v1184_v21  ;;  %v1888_v29 = vmax.f32 %v1671_v24, 0.0  ;;  %v2626_v21 = vor.u32 %v2975_v14, %v2625_v12  ;;  %v2916_v12 = vld [vmem:[%s3103_s28 + $0xf4] sm:$0xf]  ;;  %v2395_v14 = vld [vmem:[%s3103_s28 + $0xf8] sm:$0xf0] }
  0xd4   : > { %v3297_v34 = vpop.f32.mrf.mxu3 }
  0xd5   : > { %v1825_v35 = vmax.f32 %v1513_v25, 0.0  ;;  %v2016_v42 = vpack.c.bf16 %v1888_v29, %v1888_v29 }
  0xd6   : > { %v1520_v36 = vpop.f32.mrf.mxu1  ;;  %v1343_v44 = vpop.f32.mrf.mxu2 }
  0xd7   : > { %v1953_v43 = vpack.c.bf16 %v1825_v35, %v1825_v35  ;;  %2145 = vst.msk [vmem:[%s3232_s19 + $0x110] sm:$0xf] %vm2076_vm3, %v2016_v42  ;;  %v1344_v41 = vadd.f32 %v3219_v2, %v1343_v44  ;;  %v2651_v44 = vld [vmem:[%s3103_s28 + $0x2f8] sm:$0xf0] }
  0xd8   : > { %v1186_v45 = vpop.f32.mrf.mxu0 }
  0xd9   : > { %2831 = vmatmul.msk.bf16.gmra.mxu1 %vm962_vm2, %v2374_v30  ;;  %2082 = vst.msk [vmem:[%s3232_s19 + $0x14] sm:$0xf] %vm2076_vm3, %v1953_v43  ;;  %v1187_v47 = vadd.f32 %v3219_v2, %v1186_v45  ;;  %2864 = vmatmul.msk.bf16.gmra.mxu3 %vm962_vm2, %v2638_v40  ;;  %v1673_v48 = vadd.f32 %v3245_v26, %v1344_v41  ;;  %v2980_v43 = vld [vmem:[%s3103_s28 + $0x2f4] sm:$0xf]  ;;  %v2377_v45 = vld [vmem:[%s3103_s28 + $0xd0] sm:$0xf] }
  0xda   : > { %v2390_v41 = vor.u32 %v2914_v37, %v2387_v38 }
  0xdb   : > { %v1516_v49 = vadd.f32 %v1515_v60, %v1187_v47  ;;  %1225 = vmatmul.bf16.gmra.mxu0 %v2362_v11  ;;  %v1889_v50 = vmax.f32 %v1673_v48, 0.0  ;;  %1385 = vmatmul.bf16.gmra.mxu2 %v2618_v46  ;;  %v2913_v46 = vld [vmem:[%s3103_s28 + $0xd4] sm:$0xf0] }
  0xdc   : > { %v3310_v51 = vpop.f32.mrf.mxu3 }
  0xdd   : > { %v1826_v52 = vmax.f32 %v1516_v49, 0.0  ;;  %v2017_v54 = vpack.c.bf16 %v1889_v50, %v1889_v50  ;;  %v2633_v50 = vld [vmem:[%s3103_s28 + $0x2d0] sm:$0xf] }
  0xde   : > { %v1522_v53 = vpop.f32.mrf.mxu1  ;;  %v1346_v57 = vpop.f32.mrf.mxu2 }
  0xdf   : > { %v1954_v56 = vpack.c.bf16 %v1826_v52, %v1826_v52  ;;  %2146 = vst.msk [vmem:[%s3232_s19 + $0x114] sm:$0xf] %vm2076_vm3, %v2017_v54  ;;  %v1347_v26 = vadd.f32 %v3219_v2, %v1346_v57  ;;  %v2977_v52 = vld [vmem:[%s3103_s28 + $0x2d4] sm:$0xf0]  ;;  %v2654_v54 = vor.u32 %v2980_v43, %v2651_v44 }
  0xe0   : > { %v1188_v59 = vpop.f32.mrf.mxu0 }
  0xe1   : > { %2083 = vst.msk [vmem:[%s3232_s19 + $0x18] sm:$0xf] %vm2076_vm3, %v1954_v56  ;;  %v1189_v60 = vadd.f32 %v3219_v2, %v1188_v59  ;;  %v1676_v63 = vadd.f32 %v3256_v39, %v1347_v26  ;;  %v2370_v39 = vor.u32 %v2911_v7, %v2369_v6 }
  0xe3   : > { %v1518_v1 = vadd.f32 %v1517_v16, %v1189_v60  ;;  %v1890_v55 = vmax.f32 %v1676_v63, 0.0  ;;  %v2634_v60 = vor.u32 %v2977_v52, %v2633_v50  ;;  %v2918_v50 = vld [vmem:[%s3103_s28 + $0x104] sm:$0xf]  ;;  %v2403_v52 = vld [vmem:[%s3103_s28 + $0x108] sm:$0xf0] }
  0xe4   : > { %v3325_v8 = vpop.f32.mrf.mxu3 }
  0xe5   : > { %v1827_v9 = vmax.f32 %v1518_v1, 0.0  ;;  %v2018_v18 = vpack.c.bf16 %v1890_v55, %v1890_v55 }
  0xe6   : > { %v1525_v10 = vpop.f32.mrf.mxu1  ;;  %v1348_v0 = vpop.f32.mrf.mxu2 }
  0xe7   : > { %v1955_v19 = vpack.c.bf16 %v1827_v9, %v1827_v9  ;;  %2147 = vst.msk [vmem:[%s3232_s19 + $0x118] sm:$0xf] %vm2076_vm3, %v2018_v18  ;;  %v1349_v16 = vadd.f32 %v3219_v2, %v1348_v0  ;;  %v2659_v0 = vld [vmem:[%s3103_s28 + $0x308] sm:$0xf0] }
  0xe8   : > { %v1191_v20 = vpop.f32.mrf.mxu0 }
  0xe9   : > { %2832 = vmatmul.msk.bf16.gmra.mxu1 %vm962_vm2, %v2382_v5  ;;  %2084 = vst.msk [vmem:[%s3232_s19 + $0x1c] sm:$0xf] %vm2076_vm3, %v1955_v19  ;;  %v1192_v22 = vadd.f32 %v3219_v2, %v1191_v20  ;;  %2865 = vmatmul.msk.bf16.gmra.mxu3 %vm962_vm2, %v2646_v17  ;;  %v1678_v23 = vadd.f32 %v3269_v58, %v1349_v16  ;;  %v2982_v19 = vld [vmem:[%s3103_s28 + $0x304] sm:$0xf]  ;;  %v2385_v20 = vld [vmem:[%s3103_s28 + $0xe0] sm:$0xf] }
  0xea   : > { %v2398_v16 = vor.u32 %v2916_v12, %v2395_v14 }
  0xeb   : > { %v1521_v24 = vadd.f32 %v1520_v36, %v1192_v22  ;;  %1230 = vmatmul.bf16.gmra.mxu0 %v2370_v39  ;;  %v1891_v25 = vmax.f32 %v1678_v23, 0.0  ;;  %1390 = vmatmul.bf16.gmra.mxu2 %v2626_v21  ;;  %v2915_v21 = vld [vmem:[%s3103_s28 + $0xe4] sm:$0xf0] }
  0xec   : > { %v3338_v27 = vpop.f32.mrf.mxu3 }
  0xed   : > { %v1828_v28 = vmax.f32 %v1521_v24, 0.0  ;;  %v2019_v30 = vpack.c.bf16 %v1891_v25, %v1891_v25  ;;  %v2641_v25 = vld [vmem:[%s3103_s28 + $0x2e0] sm:$0xf] }
  0xee   : > { %v1527_v29 = vpop.f32.mrf.mxu1  ;;  %v1351_v32 = vpop.f32.mrf.mxu2 }
  0xef   : > { %v1956_v31 = vpack.c.bf16 %v1828_v28, %v1828_v28  ;;  %2148 = vst.msk [vmem:[%s3232_s19 + $0x11c] sm:$0xf] %vm2076_vm3, %v2019_v30  ;;  %v1352_v58 = vadd.f32 %v3219_v2, %v1351_v32  ;;  %v2979_v28 = vld [vmem:[%s3103_s28 + $0x2e4] sm:$0xf0]  ;;  %v2662_v30 = vor.u32 %v2982_v19, %v2659_v0 }
  0xf0   : > { %v1193_v35 = vpop.f32.mrf.mxu0 }
  0xf1   : > { %2085 = vst.msk [vmem:[%s3232_s19 + $0x20] sm:$0xf] %vm2076_vm3, %v1956_v31  ;;  %v1194_v36 = vadd.f32 %v3219_v2, %v1193_v35  ;;  %v1681_v40 = vadd.f32 %v3282_v13, %v1352_v58  ;;  %v2378_v13 = vor.u32 %v2913_v46, %v2377_v45 }
  0xf3   : > { %v1523_v42 = vadd.f32 %v1522_v53, %v1194_v36  ;;  %v1892_v11 = vmax.f32 %v1681_v40, 0.0  ;;  %v2642_v36 = vor.u32 %v2979_v28, %v2641_v25  ;;  %v2920_v25 = vld [vmem:[%s3103_s28 + $0x114] sm:$0xf]  ;;  %v2411_v28 = vld [vmem:[%s3103_s28 + $0x118] sm:$0xf0] }
  0xf4   : > { %v3353_v47 = vpop.f32.mrf.mxu3 }
  0xf5   : > { %v1829_v48 = vmax.f32 %v1523_v42, 0.0  ;;  %v2020_v56 = vpack.c.bf16 %v1892_v11, %v1892_v11 }
  0xf6   : > { %v1530_v49 = vpop.f32.mrf.mxu1  ;;  %v1353_v26 = vpop.f32.mrf.mxu2 }
  0xf7   : > { %v1957_v57 = vpack.c.bf16 %v1829_v48, %v1829_v48  ;;  %2149 = vst.msk [vmem:[%s3232_s19 + $0x120] sm:$0xf] %vm2076_vm3, %v2020_v56  ;;  %v1354_v53 = vadd.f32 %v3219_v2, %v1353_v26  ;;  %v2667_v26 = vld [vmem:[%s3103_s28 + $0x318] sm:$0xf0] }
  0xf8   : > { %v1196_v59 = vpop.f32.mrf.mxu0 }
  0xf9   : > { %2833 = vmatmul.msk.bf16.gmra.mxu1 %vm962_vm2, %v2390_v41  ;;  %2086 = vst.msk [vmem:[%s3232_s19 + $0x24] sm:$0xf] %vm2076_vm3, %v1957_v57  ;;  %v1197_v61 = vadd.f32 %v3219_v2, %v1196_v59  ;;  %2866 = vmatmul.msk.bf16.gmra.mxu3 %vm962_vm2, %v2654_v54  ;;  %v1683_v62 = vadd.f32 %v3297_v34, %v1354_v53  ;;  %v2984_v57 = vld [vmem:[%s3103_s28 + $0x314] sm:$0xf]  ;;  %v2393_v59 = vld [vmem:[%s3103_s28 + $0xf0] sm:$0xf] }
  0xfa   : > { %v2406_v53 = vor.u32 %v2918_v50, %v2403_v52 }
  0xfb   : > { %v1526_v63 = vadd.f32 %v1525_v10, %v1197_v61  ;;  %1235 = vmatmul.bf16.gmra.mxu0 %v2378_v13  ;;  %v1893_v1 = vmax.f32 %v1683_v62, 0.0  ;;  %1395 = vmatmul.bf16.gmra.mxu2 %v2634_v60  ;;  %v2917_v60 = vld [vmem:[%s3103_s28 + $0xf4] sm:$0xf0] }
  0xfc   : > { %v3366_v3 = vpop.f32.mrf.mxu3 }
  0xfd   : > { %v1830_v4 = vmax.f32 %v1526_v63, 0.0  ;;  %v2021_v5 = vpack.c.bf16 %v1893_v1, %v1893_v1  ;;  %v2649_v1 = vld [vmem:[%s3103_s28 + $0x2f0] sm:$0xf] }
  0xfe   : > { %v1532_v55 = vpop.f32.mrf.mxu1  ;;  %v1356_v7 = vpop.f32.mrf.mxu2 }
  0xff   : > { %v1958_v6 = vpack.c.bf16 %v1830_v4, %v1830_v4  ;;  %2150 = vst.msk [vmem:[%s3232_s19 + $0x124] sm:$0xf] %vm2076_vm3, %v2021_v5  ;;  %v1357_v34 = vadd.f32 %v3219_v2, %v1356_v7  ;;  %v2981_v4 = vld [vmem:[%s3103_s28 + $0x2f4] sm:$0xf0]  ;;  %v2670_v5 = vor.u32 %v2984_v57, %v2667_v26 }
 0x100   : > { %v1198_v9 = vpop.f32.mrf.mxu0 }
 0x101   : > { %2087 = vst.msk [vmem:[%s3232_s19 + $0x28] sm:$0xf] %vm2076_vm3, %v1958_v6  ;;  %v1199_v10 = vadd.f32 %v3219_v2, %v1198_v9  ;;  %v1686_v17 = vadd.f32 %v3310_v51, %v1357_v34  ;;  %v2386_v51 = vor.u32 %v2915_v21, %v2385_v20 }
 0x103   : > { %v1528_v18 = vadd.f32 %v1527_v29, %v1199_v10  ;;  %v1894_v39 = vmax.f32 %v1686_v17, 0.0  ;;  %v2650_v10 = vor.u32 %v2981_v4, %v2649_v1  ;;  %v2922_v1 = vld [vmem:[%s3103_s28 + $0x124] sm:$0xf]  ;;  %v2419_v4 = vld [vmem:[%s3103_s28 + $0x128] sm:$0xf0] }
 0x104   : > { %v3381_v22 = vpop.f32.mrf.mxu3 }
 0x105   : > { %v1831_v23 = vmax.f32 %v1528_v18, 0.0  ;;  %v2022_v31 = vpack.c.bf16 %v1894_v39, %v1894_v39 }
 0x106   : > { %v1535_v24 = vpop.f32.mrf.mxu1  ;;  %v1358_v58 = vpop.f32.mrf.mxu2 }
 0x107   : > { %v1959_v32 = vpack.c.bf16 %v1831_v23, %v1831_v23  ;;  %2151 = vst.msk [vmem:[%s3232_s19 + $0x128] sm:$0xf] %vm2076_vm3, %v2022_v31  ;;  %v1359_v29 = vadd.f32 %v3219_v2, %v1358_v58  ;;  %v2675_v58 = vld [vmem:[%s3103_s28 + $0x328] sm:$0xf0] }
 0x108   : > { %v1201_v35 = vpop.f32.mrf.mxu0 }
 0x109   : > { %2834 = vmatmul.msk.bf16.gmra.mxu1 %vm962_vm2, %v2398_v16  ;;  %2088 = vst.msk [vmem:[%s3232_s19 + $0x2c] sm:$0xf] %vm2076_vm3, %v1959_v32  ;;  %v1202_v37 = vadd.f32 %v3219_v2, %v1201_v35  ;;  %2867 = vmatmul.msk.bf16.gmra.mxu3 %vm962_vm2, %v2662_v30  ;;  %v1688_v38 = vadd.f32 %v3325_v8, %v1359_v29  ;;  %v2986_v32 = vld [vmem:[%s3103_s28 + $0x324] sm:$0xf]  ;;  %v2401_v35 = vld [vmem:[%s3103_s28 + $0x100] sm:$0xf] }
 0x10a   : > { %v2414_v29 = vor.u32 %v2920_v25, %v2411_v28 }
 0x10b   : > { %v1531_v40 = vadd.f32 %v1530_v49, %v1202_v37  ;;  %1240 = vmatmul.bf16.gmra.mxu0 %v2386_v51  ;;  %v1895_v42 = vmax.f32 %v1688_v38, 0.0  ;;  %1400 = vmatmul.bf16.gmra.mxu2 %v2642_v36  ;;  %v2919_v36 = vld [vmem:[%s3103_s28 + $0x104] sm:$0xf0] }
 0x10c   : > { %v3394_v43 = vpop.f32.mrf.mxu3 }
 0x10d   : > { %v1832_v44 = vmax.f32 %v1531_v40, 0.0  ;;  %v2023_v41 = vpack.c.bf16 %v1895_v42, %v1895_v42  ;;  %v2657_v42 = vld [vmem:[%s3103_s28 + $0x300] sm:$0xf] }
 0x10e   : > { %v1537_v11 = vpop.f32.mrf.mxu1  ;;  %v1361_v46 = vpop.f32.mrf.mxu2 }
 0x10f   : > { %v1960_v45 = vpack.c.bf16 %v1832_v44, %v1832_v44  ;;  %2152 = vst.msk [vmem:[%s3232_s19 + $0x12c] sm:$0xf] %vm2076_vm3, %v2023_v41  ;;  %v1362_v8 = vadd.f32 %v3219_v2, %v1361_v46  ;;  %v2983_v44 = vld [vmem:[%s3103_s28 + $0x304] sm:$0xf0]  ;;  %v2678_v41 = vor.u32 %v2986_v32, %v2675_v58 }
 0x110   : > { %v1203_v48 = vpop.f32.mrf.mxu0 }
 0x111   : > { %2089 = vst.msk [vmem:[%s3232_s19 + $0x30] sm:$0xf] %vm2076_vm3, %v1960_v45  ;;  %v1204_v49 = vadd.f32 %v3219_v2, %v1203_v48  ;;  %v1691_v54 = vadd.f32 %v3338_v27, %v1362_v8  ;;  %v2394_v27 = vor.u32 %v2917_v60, %v2393_v59 }
 0x113   : > { %v1533_v56 = vadd.f32 %v1532_v55, %v1204_v49  ;;  %v1896_v13 = vmax.f32 %v1691_v54, 0.0  ;;  %v2658_v49 = vor.u32 %v2983_v44, %v2657_v42  ;;  %v2924_v42 = vld [vmem:[%s3103_s28 + $0x134] sm:$0xf]  ;;  %v2427_v44 = vld [vmem:[%s3103_s28 + $0x138] sm:$0xf0] }
 0x114   : > { %v3409_v61 = vpop.f32.mrf.mxu3 }
 0x115   : > { %v1833_v62 = vmax.f32 %v1533_v56, 0.0  ;;  %v2024_v6 = vpack.c.bf16 %v1896_v13, %v1896_v13 }
 0x116   : > { %v1540_v63 = vpop.f32.mrf.mxu1  ;;  %v1363_v34 = vpop.f32.mrf.mxu2 }
 0x117   : > { %v1961_v7 = vpack.c.bf16 %v1833_v62, %v1833_v62  ;;  %2153 = vst.msk [vmem:[%s3232_s19 + $0x130] sm:$0xf] %vm2076_vm3, %v2024_v6  ;;  %v1364_v55 = vadd.f32 %v3219_v2, %v1363_v34  ;;  %v2683_v34 = vld [vmem:[%s3103_s28 + $0x338] sm:$0xf0] }
 0x118   : > { %v1206_v9 = vpop.f32.mrf.mxu0 }
 0x119   : > { %2835 = vmatmul.msk.bf16.gmra.mxu1 %vm962_vm2, %v2406_v53  ;;  %2090 = vst.msk [vmem:[%s3232_s19 + $0x34] sm:$0xf] %vm2076_vm3, %v1961_v7  ;;  %v1207_v12 = vadd.f32 %v3219_v2, %v1206_v9  ;;  %2868 = vmatmul.msk.bf16.gmra.mxu3 %vm962_vm2, %v2670_v5  ;;  %v1693_v14 = vadd.f32 %v3353_v47, %v1364_v55  ;;  %v2988_v7 = vld [vmem:[%s3103_s28 + $0x334] sm:$0xf]  ;;  %v2409_v9 = vld [vmem:[%s3103_s28 + $0x110] sm:$0xf] }
 0x11a   : > { %v2422_v55 = vor.u32 %v2922_v1, %v2419_v4 }
 0x11b   : > { %v1536_v17 = vadd.f32 %v1535_v24, %v1207_v12  ;;  %1245 = vmatmul.bf16.gmra.mxu0 %v2394_v27  ;;  %v1897_v18 = vmax.f32 %v1693_v14, 0.0  ;;  %1405 = vmatmul.bf16.gmra.mxu2 %v2650_v10  ;;  %v2921_v10 = vld [vmem:[%s3103_s28 + $0x114] sm:$0xf0] }
 0x11c   : > { %v3422_v19 = vpop.f32.mrf.mxu3 }
 0x11d   : > { %v1834_v0 = vmax.f32 %v1536_v17, 0.0  ;;  %v2025_v16 = vpack.c.bf16 %v1897_v18, %v1897_v18  ;;  %v2665_v18 = vld [vmem:[%s3103_s28 + $0x310] sm:$0xf] }
 0x11e   : > { %v1542_v39 = vpop.f32.mrf.mxu1  ;;  %v1366_v21 = vpop.f32.mrf.mxu2 }
 0x11f   : > { %v1962_v20 = vpack.c.bf16 %v1834_v0, %v1834_v0  ;;  %2154 = vst.msk [vmem:[%s3232_s19 + $0x134] sm:$0xf] %vm2076_vm3, %v2025_v16  ;;  %v1367_v47 = vadd.f32 %v3219_v2, %v1366_v21  ;;  %v2985_v0 = vld [vmem:[%s3103_s28 + $0x314] sm:$0xf0]  ;;  %v2686_v16 = vor.u32 %v2988_v7, %v2683_v34 }
 0x120   : > { %v1208_v23 = vpop.f32.mrf.mxu0 }
 0x121   : > { %2091 = vst.msk [vmem:[%s3232_s19 + $0x38] sm:$0xf] %vm2076_vm3, %v1962_v20  ;;  %v1209_v24 = vadd.f32 %v3219_v2, %v1208_v23  ;;  %v1696_v30 = vadd.f32 %v3366_v3, %v1367_v47  ;;  %v2402_v3 = vor.u32 %v2919_v36, %v2401_v35 }
 0x123   : > { %v1538_v31 = vadd.f32 %v1537_v11, %v1209_v24  ;;  %v1898_v51 = vmax.f32 %v1696_v30, 0.0  ;;  %v2666_v24 = vor.u32 %v2985_v0, %v2665_v18  ;;  %v2926_v18 = vld [vmem:[%s3103_s28 + $0x144] sm:$0xf]  ;;  %v2435_v0 = vld [vmem:[%s3103_s28 + $0x148] sm:$0xf0] }
 0x124   : > { %v3437_v37 = vpop.f32.mrf.mxu3 }
 0x125   : > { %v1835_v38 = vmax.f32 %v1538_v31, 0.0  ;;  %v2026_v45 = vpack.c.bf16 %v1898_v51, %v1898_v51 }
 0x126   : > { %v1545_v40 = vpop.f32.mrf.mxu1  ;;  %v1368_v8 = vpop.f32.mrf.mxu2 }
 0x127   : > { %v1963_v46 = vpack.c.bf16 %v1835_v38, %v1835_v38  ;;  %2155 = vst.msk [vmem:[%s3232_s19 + $0x138] sm:$0xf] %vm2076_vm3, %v2026_v45  ;;  %v1369_v11 = vadd.f32 %v3219_v2, %v1368_v8  ;;  %v2691_v8 = vld [vmem:[%s3103_s28 + $0x348] sm:$0xf0] }
 0x128   : > { %v1211_v48 = vpop.f32.mrf.mxu0 }
 0x129   : > { %2836 = vmatmul.msk.bf16.gmra.mxu1 %vm962_vm2, %v2414_v29  ;;  %2092 = vst.msk [vmem:[%s3232_s19 + $0x3c] sm:$0xf] %vm2076_vm3, %v1963_v46  ;;  %v1212_v50 = vadd.f32 %v3219_v2, %v1211_v48  ;;  %2869 = vmatmul.msk.bf16.gmra.mxu3 %vm962_vm2, %v2678_v41  ;;  %v1698_v52 = vadd.f32 %v3381_v22, %v1369_v11  ;;  %v2990_v46 = vld [vmem:[%s3103_s28 + $0x344] sm:$0xf]  ;;  %v2417_v48 = vld [vmem:[%s3103_s28 + $0x120] sm:$0xf] }
 0x12a   : > { %v2430_v11 = vor.u32 %v2924_v42, %v2427_v44 }
 0x12b   : > { %v1541_v54 = vadd.f32 %v1540_v63, %v1212_v50  ;;  %1250 = vmatmul.bf16.gmra.mxu0 %v2402_v3  ;;  %v1899_v56 = vmax.f32 %v1698_v52, 0.0  ;;  %1410 = vmatmul.bf16.gmra.mxu2 %v2658_v49  ;;  %v2923_v49 = vld [vmem:[%s3103_s28 + $0x124] sm:$0xf0] }
 0x12c   : > { %v3450_v57 = vpop.f32.mrf.mxu3 }
 0x12d   : > { %v1836_v26 = vmax.f32 %v1541_v54, 0.0  ;;  %v2027_v53 = vpack.c.bf16 %v1899_v56, %v1899_v56  ;;  %v2673_v56 = vld [vmem:[%s3103_s28 + $0x320] sm:$0xf] }
 0x12e   : > { %v1547_v13 = vpop.f32.mrf.mxu1  ;;  %v1371_v60 = vpop.f32.mrf.mxu2 }
 0x12f   : > { %v1964_v59 = vpack.c.bf16 %v1836_v26, %v1836_v26  ;;  %2156 = vst.msk [vmem:[%s3232_s19 + $0x13c] sm:$0xf] %vm2076_vm3, %v2027_v53  ;;  %v1372_v22 = vadd.f32 %v3219_v2, %v1371_v60  ;;  %v2987_v26 = vld [vmem:[%s3103_s28 + $0x324] sm:$0xf0]  ;;  %v2694_v53 = vor.u32 %v2990_v46, %v2691_v8 }
 0x130   : > { %v1213_v62 = vpop.f32.mrf.mxu0 }
 0x131   : > { %2093 = vst.msk [vmem:[%s3232_s19 + $0x40] sm:$0xf] %vm2076_vm3, %v1964_v59  ;;  %v1214_v63 = vadd.f32 %v3219_v2, %v1213_v62  ;;  %v1701_v5 = vadd.f32 %v3394_v43, %v1372_v22  ;;  %v2410_v43 = vor.u32 %v2921_v10, %v2409_v9 }
 0x133   : > { %v1543_v6 = vadd.f32 %v1542_v39, %v1214_v63  ;;  %v1900_v27 = vmax.f32 %v1701_v5, 0.0  ;;  %v2674_v63 = vor.u32 %v2987_v26, %v2673_v56  ;;  %v2928_v56 = vld [vmem:[%s3103_s28 + $0x154] sm:$0xf]  ;;  %v2443_v26 = vld [vmem:[%s3103_s28 + $0x158] sm:$0xf0] }
 0x134   : > { %v3465_v12 = vpop.f32.mrf.mxu3 }
 0x135   : > { %v1837_v14 = vmax.f32 %v1543_v6, 0.0  ;;  %v2028_v20 = vpack.c.bf16 %v1900_v27, %v1900_v27 }
 0x136   : > { %v1550_v17 = vpop.f32.mrf.mxu1  ;;  %v1373_v47 = vpop.f32.mrf.mxu2 }
 0x137   : > { %v1965_v21 = vpack.c.bf16 %v1837_v14, %v1837_v14  ;;  %2157 = vst.msk [vmem:[%s3232_s19 + $0x140] sm:$0xf] %vm2076_vm3, %v2028_v20  ;;  %v1374_v39 = vadd.f32 %v3219_v2, %v1373_v47  ;;  %v2699_v47 = vld [vmem:[%s3103_s28 + $0x358] sm:$0xf0] }
 0x138   : > { %v1216_v23 = vpop.f32.mrf.mxu0 }
 0x139   : > { %2837 = vmatmul.msk.bf16.gmra.mxu1 %vm962_vm2, %v2422_v55  ;;  %2094 = vst.msk [vmem:[%s3232_s19 + $0x44] sm:$0xf] %vm2076_vm3, %v1965_v21  ;;  %v1217_v25 = vadd.f32 %v3219_v2, %v1216_v23  ;;  %2870 = vmatmul.msk.bf16.gmra.mxu3 %vm962_vm2, %v2686_v16  ;;  %v1703_v28 = vadd.f32 %v3409_v61, %v1374_v39  ;;  %v2992_v21 = vld [vmem:[%s3103_s28 + $0x354] sm:$0xf]  ;;  %v2425_v23 = vld [vmem:[%s3103_s28 + $0x130] sm:$0xf] }
 0x13a   : > { %v2438_v39 = vor.u32 %v2926_v18, %v2435_v0 }
 0x13b   : > { %v1546_v30 = vadd.f32 %v1545_v40, %v1217_v25  ;;  %1255 = vmatmul.bf16.gmra.mxu0 %v2410_v43  ;;  %v1901_v31 = vmax.f32 %v1703_v28, 0.0  ;;  %1415 = vmatmul.bf16.gmra.mxu2 %v2666_v24  ;;  %v2925_v24 = vld [vmem:[%s3103_s28 + $0x134] sm:$0xf0] }
 0x13c   : > { %v3478_v32 = vpop.f32.mrf.mxu3 }
 0x13d   : > { %v1838_v58 = vmax.f32 %v1546_v30, 0.0  ;;  %v2029_v29 = vpack.c.bf16 %v1901_v31, %v1901_v31  ;;  %v2681_v31 = vld [vmem:[%s3103_s28 + $0x330] sm:$0xf] }
 0x13e   : > { %v1552_v51 = vpop.f32.mrf.mxu1  ;;  %v1376_v36 = vpop.f32.mrf.mxu2 }
 0x13f   : > { %v1966_v35 = vpack.c.bf16 %v1838_v58, %v1838_v58  ;;  %2158 = vst.msk [vmem:[%s3232_s19 + $0x144] sm:$0xf] %vm2076_vm3, %v2029_v29  ;;  %v1377_v61 = vadd.f32 %v3219_v2, %v1376_v36  ;;  %v2989_v58 = vld [vmem:[%s3103_s28 + $0x334] sm:$0xf0]  ;;  %v2702_v29 = vor.u32 %v2992_v21, %v2699_v47 }
 0x140   : > { %v1218_v38 = vpop.f32.mrf.mxu0 }
 0x141   : > { %2095 = vst.msk [vmem:[%s3232_s19 + $0x48] sm:$0xf] %vm2076_vm3, %v1966_v35  ;;  %v1219_v40 = vadd.f32 %v3219_v2, %v1218_v38  ;;  %v1706_v41 = vadd.f32 %v3422_v19, %v1377_v61  ;;  %v2418_v19 = vor.u32 %v2923_v49, %v2417_v48 }
 0x143   : > { %v1548_v45 = vadd.f32 %v1547_v13, %v1219_v40  ;;  %v1902_v3 = vmax.f32 %v1706_v41, 0.0  ;;  %v2682_v40 = vor.u32 %v2989_v58, %v2681_v31  ;;  %v2930_v31 = vld [vmem:[%s3103_s28 + $0x164] sm:$0xf]  ;;  %v2451_v58 = vld [vmem:[%s3103_s28 + $0x168] sm:$0xf0] }
 0x144   : > { %v3493_v50 = vpop.f32.mrf.mxu3 }
 0x145   : > { %v1839_v52 = vmax.f32 %v1548_v45, 0.0  ;;  %v2030_v59 = vpack.c.bf16 %v1902_v3, %v1902_v3 }
 0x146   : > { %v1555_v54 = vpop.f32.mrf.mxu1  ;;  %v1378_v22 = vpop.f32.mrf.mxu2 }
 0x147   : > { %v1967_v60 = vpack.c.bf16 %v1839_v52, %v1839_v52  ;;  %2159 = vst.msk [vmem:[%s3232_s19 + $0x148] sm:$0xf] %vm2076_vm3, %v2030_v59  ;;  %v1379_v13 = vadd.f32 %v3219_v2, %v1378_v22  ;;  %v2707_v22 = vld [vmem:[%s3103_s28 + $0x368] sm:$0xf0] }
 0x148   : > { %v1221_v62 = vpop.f32.mrf.mxu0 }
 0x149   : > { %2838 = vmatmul.msk.bf16.gmra.mxu1 %vm962_vm2, %v2430_v11  ;;  %2096 = vst.msk [vmem:[%s3232_s19 + $0x4c] sm:$0xf] %vm2076_vm3, %v1967_v60  ;;  %v1222_v1 = vadd.f32 %v3219_v2, %v1221_v62  ;;  %2871 = vmatmul.msk.bf16.gmra.mxu3 %vm962_vm2, %v2694_v53  ;;  %v1708_v4 = vadd.f32 %v3437_v37, %v1379_v13  ;;  %v2994_v60 = vld [vmem:[%s3103_s28 + $0x364] sm:$0xf]  ;;  %v2433_v62 = vld [vmem:[%s3103_s28 + $0x140] sm:$0xf] }
 0x14a   : > { %v2446_v13 = vor.u32 %v2928_v56, %v2443_v26 }
 0x14b   : > { %v1551_v5 = vadd.f32 %v1550_v17, %v1222_v1  ;;  %1260 = vmatmul.bf16.gmra.mxu0 %v2418_v19  ;;  %v1903_v6 = vmax.f32 %v1708_v4, 0.0  ;;  %1420 = vmatmul.bf16.gmra.mxu2 %v2674_v63  ;;  %v2927_v63 = vld [vmem:[%s3103_s28 + $0x144] sm:$0xf0] }
 0x14c   : > { %v3506_v7 = vpop.f32.mrf.mxu3 }
 0x14d   : > { %v1840_v34 = vmax.f32 %v1551_v5, 0.0  ;;  %v2031_v55 = vpack.c.bf16 %v1903_v6, %v1903_v6  ;;  %v2689_v6 = vld [vmem:[%s3103_s28 + $0x340] sm:$0xf] }
 0x14e   : > { %v1557_v27 = vpop.f32.mrf.mxu1  ;;  %v1381_v10 = vpop.f32.mrf.mxu2 }
 0x14f   : > { %v1968_v9 = vpack.c.bf16 %v1840_v34, %v1840_v34  ;;  %2160 = vst.msk [vmem:[%s3232_s19 + $0x14c] sm:$0xf] %vm2076_vm3, %v2031_v55  ;;  %v1382_v37 = vadd.f32 %v3219_v2, %v1381_v10  ;;  %v2991_v34 = vld [vmem:[%s3103_s28 + $0x344] sm:$0xf0] }
 0x150   : > { %v1223_v14 = vpop.f32.mrf.mxu0 }
 0x151   : > { %2097 = vst.msk [vmem:[%s3232_s19 + $0x50] sm:$0xf] %vm2076_vm3, %v1968_v9  ;;  %v1224_v17 = vadd.f32 %v3219_v2, %v1223_v14  ;;  %v1711_v16 = vadd.f32 %v3450_v57, %v1382_v37  ;;  %v2426_v57 = vor.u32 %v2925_v24, %v2425_v23 }
 0x153   : > { %v1553_v20 = vadd.f32 %v1552_v51, %v1224_v17  ;;  %v1904_v43 = vmax.f32 %v1711_v16, 0.0  ;;  %v2690_v17 = vor.u32 %v2991_v34, %v2689_v6  ;;  %v2932_v6 = vld [vmem:[%s3103_s28 + $0x174] sm:$0xf]  ;;  %v2459_v34 = vld [vmem:[%s3103_s28 + $0x178] sm:$0xf0] }
 0x154   : > { %v3521_v25 = vpop.f32.mrf.mxu3 }
 0x155   : > { %v1841_v28 = vmax.f32 %v1553_v20, 0.0  ;;  %v2032_v35 = vpack.c.bf16 %v1904_v43, %v1904_v43 }
 0x156   : > { %v1560_v30 = vpop.f32.mrf.mxu1  ;;  %v1383_v61 = vpop.f32.mrf.mxu2 }
 0x157   : > { %v1969_v36 = vpack.c.bf16 %v1841_v28, %v1841_v28  ;;  %2161 = vst.msk [vmem:[%s3232_s19 + $0x150] sm:$0xf] %vm2076_vm3, %v2032_v35  ;;  %v1384_v51 = vadd.f32 %v3219_v2, %v1383_v61  ;;  %v2715_v61 = vld [vmem:[%s3103_s28 + $0x378] sm:$0xf0] }
 0x158   : > { %v1226_v38 = vpop.f32.mrf.mxu0 }
 0x159   : > { %2839 = vmatmul.msk.bf16.gmra.mxu1 %vm962_vm2, %v2438_v39  ;;  %2098 = vst.msk [vmem:[%s3232_s19 + $0x54] sm:$0xf] %vm2076_vm3, %v1969_v36  ;;  %v1227_v42 = vadd.f32 %v3219_v2, %v1226_v38  ;;  %2872 = vmatmul.msk.bf16.gmra.mxu3 %vm962_vm2, %v2702_v29  ;;  %v1713_v44 = vadd.f32 %v3465_v12, %v1384_v51  ;;  %v2996_v36 = vld [vmem:[%s3103_s28 + $0x374] sm:$0xf]  ;;  %v2441_v38 = vld [vmem:[%s3103_s28 + $0x150] sm:$0xf] }
 0x15a   : > { %v2454_v51 = vor.u32 %v2930_v31, %v2451_v58 }
 0x15b   : > { %v1556_v41 = vadd.f32 %v1555_v54, %v1227_v42  ;;  %1265 = vmatmul.bf16.gmra.mxu0 %v2426_v57  ;;  %v1905_v45 = vmax.f32 %v1713_v44, 0.0  ;;  %1425 = vmatmul.bf16.gmra.mxu2 %v2682_v40  ;;  %v2929_v40 = vld [vmem:[%s3103_s28 + $0x154] sm:$0xf0] }
 0x15c   : > { %v3534_v46 = vpop.f32.mrf.mxu3 }
 0x15d   : > { %v1842_v8 = vmax.f32 %v1556_v41, 0.0  ;;  %v2033_v11 = vpack.c.bf16 %v1905_v45, %v1905_v45  ;;  %v2697_v45 = vld [vmem:[%s3103_s28 + $0x350] sm:$0xf] }
 0x15e   : > { %v1562_v3 = vpop.f32.mrf.mxu1  ;;  %v1386_v49 = vpop.f32.mrf.mxu2 }
 0x15f   : > { %v1970_v48 = vpack.c.bf16 %v1842_v8, %v1842_v8  ;;  %2162 = vst.msk [vmem:[%s3232_s19 + $0x154] sm:$0xf] %vm2076_vm3, %v2033_v11  ;;  %v1387_v12 = vadd.f32 %v3219_v2, %v1386_v49  ;;  %v2993_v8 = vld [vmem:[%s3103_s28 + $0x354] sm:$0xf0]  ;;  %v2718_v11 = vor.u32 %v2996_v36, %v2715_v61 }
 0x160   : > { %v1228_v52 = vpop.f32.mrf.mxu0 }
 0x161   : > { %2099 = vst.msk [vmem:[%s3232_s19 + $0x58] sm:$0xf] %vm2076_vm3, %v1970_v48  ;;  %v1229_v54 = vadd.f32 %v3219_v2, %v1228_v52  ;;  %v1716_v53 = vadd.f32 %v3478_v32, %v1387_v12  ;;  %v2710_v2 = vor.u32 %v2994_v60, %v2707_v22  ;;  %v2434_v32 = vor.u32 %v2927_v63, %v2433_v62 }
 0x163   : > { %v1558_v59 = vadd.f32 %v1557_v27, %v1229_v54  ;;  %v1906_v19 = vmax.f32 %v1716_v53, 0.0  ;;  %v3558_v27 = vld [vmem:[%s3997_s2] ss:$0 sm:$0xff]  ;;  %v2698_v54 = vor.u32 %v2993_v8, %v2697_v45  ;;  %v2934_v45 = vld [vmem:[%s3103_s28 + $0x184] sm:$0xf] }
 0x164   : > { %v3549_v1 = vpop.f32.mrf.mxu3  ;;  %v2467_v8 = vld [vmem:[%s3103_s28 + $0x188] sm:$0xf0] }
 0x165   : > { %v1843_v4 = vmax.f32 %v1558_v59, 0.0  ;;  %v2034_v55 = vpack.c.bf16 %v1906_v19, %v1906_v19 }
 0x166   : > { %v1565_v5 = vpop.f32.mrf.mxu1  ;;  %v1388_v10 = vpop.f32.mrf.mxu2 }
 0x167   : > { %v1971_v9 = vpack.c.bf16 %v1843_v4, %v1843_v4  ;;  %2163 = vst.msk [vmem:[%s3232_s19 + $0x158] sm:$0xf] %vm2076_vm3, %v2034_v55  ;;  %v1389_v37 = vadd.f32 %v3558_v27, %v1388_v10  ;;  %v2723_v10 = vld [vmem:[%s3103_s28 + $0x388] sm:$0xf0] }
 0x168   : > { %v1231_v14 = vpop.f32.mrf.mxu0 }
 0x169   : > { %2840 = vmatmul.msk.bf16.gmra.mxu1 %vm962_vm2, %v2446_v13  ;;  %2100 = vst.msk [vmem:[%s3232_s19 + $0x5c] sm:$0xf] %vm2076_vm3, %v1971_v9  ;;  %v1232_v18 = vadd.f32 %v3558_v27, %v1231_v14  ;;  %2873 = vmatmul.msk.bf16.gmra.mxu3 %vm962_vm2, %v2710_v2  ;;  %v1718_v0 = vadd.f32 %v3493_v50, %v1389_v37  ;;  %v2998_v9 = vld [vmem:[%s3103_s28 + $0x384] sm:$0xf]  ;;  %v2449_v14 = vld [vmem:[%s3103_s28 + $0x160] sm:$0xf] }
 0x16a   : > { %v2462_v37 = vor.u32 %v2932_v6, %v2459_v34 }
 0x16b   : > { %v1561_v16 = vadd.f32 %v1560_v30, %v1232_v18  ;;  %1270 = vmatmul.bf16.gmra.mxu0 %v2434_v32  ;;  %v1907_v20 = vmax.f32 %v1718_v0, 0.0  ;;  %1430 = vmatmul.bf16.gmra.mxu2 %v2690_v17  ;;  %v2931_v17 = vld [vmem:[%s3103_s28 + $0x164] sm:$0xf0] }
 0x16c   : > { %v3567_v21 = vpop.f32.mrf.mxu3 }
 0x16d   : > { %v1844_v47 = vmax.f32 %v1561_v16, 0.0  ;;  %v2035_v39 = vpack.c.bf16 %v1907_v20, %v1907_v20  ;;  %v2705_v20 = vld [vmem:[%s3103_s28 + $0x360] sm:$0xf] }
 0x16e   : > { %v1567_v43 = vpop.f32.mrf.mxu1  ;;  %v1391_v24 = vpop.f32.mrf.mxu2 }
 0x16f   : > { %v1972_v23 = vpack.c.bf16 %v1844_v47, %v1844_v47  ;;  %2164 = vst.msk [vmem:[%s3232_s19 + $0x15c] sm:$0xf] %vm2076_vm3, %v2035_v39  ;;  %v1392_v50 = vadd.f32 %v3558_v27, %v1391_v24  ;;  %v2995_v47 = vld [vmem:[%s3103_s28 + $0x364] sm:$0xf0]  ;;  %v2726_v39 = vor.u32 %v2998_v9, %v2723_v10 }
 0x170   : > { %v1233_v28 = vpop.f32.mrf.mxu0 }
 0x171   : > { %2101 = vst.msk [vmem:[%s3232_s19 + $0x60] sm:$0xf] %vm2076_vm3, %v1972_v23  ;;  %v1234_v30 = vadd.f32 %v3558_v27, %v1233_v28  ;;  %v1721_v29 = vadd.f32 %v3506_v7, %v1392_v50  ;;  %v2442_v7 = vor.u32 %v2929_v40, %v2441_v38 }
 0x173   : > { %v1563_v35 = vadd.f32 %v1562_v3, %v1234_v30  ;;  %v1908_v57 = vmax.f32 %v1721_v29, 0.0  ;;  %v2706_v30 = vor.u32 %v2995_v47, %v2705_v20  ;;  %v2936_v20 = vld [vmem:[%s3103_s28 + $0x194] sm:$0xf]  ;;  %v2475_v47 = vld [vmem:[%s3103_s28 + $0x198] sm:$0xf0] }
 0x174   : > { %v3582_v42 = vpop.f32.mrf.mxu3 }
 0x175   : > { %v1845_v44 = vmax.f32 %v1563_v35, 0.0  ;;  %v2036_v48 = vpack.c.bf16 %v1908_v57, %v1908_v57 }
 0x176   : > { %v1570_v41 = vpop.f32.mrf.mxu1  ;;  %v1393_v12 = vpop.f32.mrf.mxu2 }
 0x177   : > { %v1973_v49 = vpack.c.bf16 %v1845_v44, %v1845_v44  ;;  %2165 = vst.msk [vmem:[%s3232_s19 + $0x160] sm:$0xf] %vm2076_vm3, %v2036_v48  ;;  %v1394_v3 = vadd.f32 %v3558_v27, %v1393_v12  ;;  %v2731_v12 = vld [vmem:[%s3103_s28 + $0x398] sm:$0xf0] }
 0x178   : > { %v1236_v52 = vpop.f32.mrf.mxu0 }
 0x179   : > { %2841 = vmatmul.msk.bf16.gmra.mxu1 %vm962_vm2, %v2454_v51  ;;  %2102 = vst.msk [vmem:[%s3232_s19 + $0x64] sm:$0xf] %vm2076_vm3, %v1973_v49  ;;  %v1237_v56 = vadd.f32 %v3558_v27, %v1236_v52  ;;  %2874 = vmatmul.msk.bf16.gmra.mxu3 %vm962_vm2, %v2718_v11  ;;  %v1723_v26 = vadd.f32 %v3521_v25, %v1394_v3  ;;  %v3000_v49 = vld [vmem:[%s3103_s28 + $0x394] sm:$0xf]  ;;  %v2457_v52 = vld [vmem:[%s3103_s28 + $0x170] sm:$0xf] }
 0x17a   : > { %v2470_v3 = vor.u32 %v2934_v45, %v2467_v8 }
 0x17b   : > { %v1566_v53 = vadd.f32 %v1565_v5, %v1237_v56  ;;  %1275 = vmatmul.bf16.gmra.mxu0 %v2442_v7  ;;  %v1909_v59 = vmax.f32 %v1723_v26, 0.0  ;;  %1435 = vmatmul.bf16.gmra.mxu2 %v2698_v54  ;;  %v2933_v54 = vld [vmem:[%s3103_s28 + $0x174] sm:$0xf0] }
 0x17c   : > { %v3595_v60 = vpop.f32.mrf.mxu3 }
 0x17d   : > { %v1846_v22 = vmax.f32 %v1566_v53, 0.0  ;;  %v2037_v13 = vpack.c.bf16 %v1909_v59, %v1909_v59  ;;  %v2713_v59 = vld [vmem:[%s3103_s28 + $0x370] sm:$0xf] }
 0x17e   : > { %v1572_v19 = vpop.f32.mrf.mxu1  ;;  %v1396_v63 = vpop.f32.mrf.mxu2 }
 0x17f   : > { %v1974_v62 = vpack.c.bf16 %v1846_v22, %v1846_v22  ;;  %2166 = vst.msk [vmem:[%s3232_s19 + $0x164] sm:$0xf] %vm2076_vm3, %v2037_v13  ;;  %v1397_v25 = vadd.f32 %v3558_v27, %v1396_v63  ;;  %v2997_v22 = vld [vmem:[%s3103_s28 + $0x374] sm:$0xf0]  ;;  %v2734_v13 = vor.u32 %v3000_v49, %v2731_v12 }
 0x180   : > { %v1238_v4 = vpop.f32.mrf.mxu0 }
 0x181   : > { %2103 = vst.msk [vmem:[%s3232_s19 + $0x68] sm:$0xf] %vm2076_vm3, %v1974_v62  ;;  %v1239_v5 = vadd.f32 %v3558_v27, %v1238_v4  ;;  %v1726_v2 = vadd.f32 %v3534_v46, %v1397_v25  ;;  %v2450_v46 = vor.u32 %v2931_v17, %v2449_v14 }
 0x183   : > { %v1568_v55 = vadd.f32 %v1567_v43, %v1239_v5  ;;  %v1910_v32 = vmax.f32 %v1726_v2, 0.0  ;;  %v2714_v5 = vor.u32 %v2997_v22, %v2713_v59  ;;  %v2938_v59 = vld [vmem:[%s3103_s28 + $0x1a4] sm:$0xf]  ;;  %v2483_v22 = vld [vmem:[%s3103_s28 + $0x1a8] sm:$0xf0] }
 0x184   : > { %v3610_v18 = vpop.f32.mrf.mxu3 }
 0x185   : > { %v1847_v0 = vmax.f32 %v1568_v55, 0.0  ;;  %v2038_v23 = vpack.c.bf16 %v1910_v32, %v1910_v32 }
 0x186   : > { %v1575_v16 = vpop.f32.mrf.mxu1  ;;  %v1398_v50 = vpop.f32.mrf.mxu2 }
 0x187   : > { %v1975_v24 = vpack.c.bf16 %v1847_v0, %v1847_v0  ;;  %2167 = vst.msk [vmem:[%s3232_s19 + $0x168] sm:$0xf] %vm2076_vm3, %v2038_v23  ;;  %v1399_v43 = vadd.f32 %v3558_v27, %v1398_v50  ;;  %v2739_v50 = vld [vmem:[%s3103_s28 + $0x3a8] sm:$0xf0] }
 0x188   : > { %v1241_v28 = vpop.f32.mrf.mxu0 }
 0x189   : > { %2842 = vmatmul.msk.bf16.gmra.mxu1 %vm962_vm2, %v2462_v37  ;;  %2104 = vst.msk [vmem:[%s3232_s19 + $0x6c] sm:$0xf] %vm2076_vm3, %v1975_v24  ;;  %v1242_v31 = vadd.f32 %v3558_v27, %v1241_v28  ;;  %2875 = vmatmul.msk.bf16.gmra.mxu3 %vm962_vm2, %v2726_v39  ;;  %v1728_v58 = vadd.f32 %v3549_v1, %v1399_v43  ;;  %v3002_v24 = vld [vmem:[%s3103_s28 + $0x3a4] sm:$0xf]  ;;  %v2465_v28 = vld [vmem:[%s3103_s28 + $0x180] sm:$0xf] }
 0x18a   : > { %v2478_v43 = vor.u32 %v2936_v20, %v2475_v47 }
 0x18b   : > { %v1571_v29 = vadd.f32 %v1570_v41, %v1242_v31  ;;  %1280 = vmatmul.bf16.gmra.mxu0 %v2450_v46  ;;  %v1911_v35 = vmax.f32 %v1728_v58, 0.0  ;;  %1440 = vmatmul.bf16.gmra.mxu2 %v2706_v30  ;;  %v2935_v30 = vld [vmem:[%s3103_s28 + $0x184] sm:$0xf0] }
 0x18c   : > { %v3623_v36 = vpop.f32.mrf.mxu3 }
 0x18d   : > { %v1848_v61 = vmax.f32 %v1571_v29, 0.0  ;;  %v2039_v51 = vpack.c.bf16 %v1911_v35, %v1911_v35  ;;  %v2721_v35 = vld [vmem:[%s3103_s28 + $0x380] sm:$0xf] }
 0x18e   : > { %v1577_v57 = vpop.f32.mrf.mxu1  ;;  %v1401_v40 = vpop.f32.mrf.mxu2 }
 0x18f   : > { %v1976_v38 = vpack.c.bf16 %v1848_v61, %v1848_v61  ;;  %2168 = vst.msk [vmem:[%s3232_s19 + $0x16c] sm:$0xf] %vm2076_vm3, %v2039_v51  ;;  %v1402_v1 = vadd.f32 %v3558_v27, %v1401_v40  ;;  %v2999_v61 = vld [vmem:[%s3103_s28 + $0x384] sm:$0xf0]  ;;  %v2742_v51 = vor.u32 %v3002_v24, %v2739_v50 }
 0x190   : > { %v1243_v44 = vpop.f32.mrf.mxu0 }
 0x191   : > { %2105 = vst.msk [vmem:[%s3232_s19 + $0x70] sm:$0xf] %vm2076_vm3, %v1976_v38  ;;  %v1244_v41 = vadd.f32 %v3558_v27, %v1243_v44  ;;  %v1731_v11 = vadd.f32 %v3567_v21, %v1402_v1  ;;  %v2458_v21 = vor.u32 %v2933_v54, %v2457_v52 }
 0x193   : > { %v1573_v48 = vadd.f32 %v1572_v19, %v1244_v41  ;;  %v1912_v7 = vmax.f32 %v1731_v11, 0.0  ;;  %v2722_v41 = vor.u32 %v2999_v61, %v2721_v35  ;;  %v2940_v35 = vld [vmem:[%s3103_s28 + $0x1b4] sm:$0xf]  ;;  %v2491_v61 = vld [vmem:[%s3103_s28 + $0x1b8] sm:$0xf0] }
 0x194   : > { %v3638_v56 = vpop.f32.mrf.mxu3 }
 0x195   : > { %v1849_v26 = vmax.f32 %v1573_v48, 0.0  ;;  %v2040_v62 = vpack.c.bf16 %v1912_v7, %v1912_v7 }
 0x196   : > { %v1580_v53 = vpop.f32.mrf.mxu1  ;;  %v1403_v25 = vpop.f32.mrf.mxu2 }
 0x197   : > { %v1977_v63 = vpack.c.bf16 %v1849_v26, %v1849_v26  ;;  %2169 = vst.msk [vmem:[%s3232_s19 + $0x170] sm:$0xf] %vm2076_vm3, %v2040_v62  ;;  %v1404_v19 = vadd.f32 %v3558_v27, %v1403_v25  ;;  %v2747_v25 = vld [vmem:[%s3103_s28 + $0x3b8] sm:$0xf0] }
 0x198   : > { %v1246_v4 = vpop.f32.mrf.mxu0 }
 0x199   : > { %2843 = vmatmul.msk.bf16.gmra.mxu1 %vm962_vm2, %v2470_v3  ;;  %2106 = vst.msk [vmem:[%s3232_s19 + $0x74] sm:$0xf] %vm2076_vm3, %v1977_v63  ;;  %v1247_v6 = vadd.f32 %v3558_v27, %v1246_v4  ;;  %2876 = vmatmul.msk.bf16.gmra.mxu3 %vm962_vm2, %v2734_v13  ;;  %v1733_v34 = vadd.f32 %v3582_v42, %v1404_v19  ;;  %v3004_v63 = vld [vmem:[%s3103_s28 + $0x3b4] sm:$0xf]  ;;  %v2473_v4 = vld [vmem:[%s3103_s28 + $0x190] sm:$0xf] }
 0x19a   : > { %v2486_v19 = vor.u32 %v2938_v59, %v2483_v22 }
 0x19b   : > { %v1576_v2 = vadd.f32 %v1575_v16, %v1247_v6  ;;  %1285 = vmatmul.bf16.gmra.mxu0 %v2458_v21  ;;  %v1913_v55 = vmax.f32 %v1733_v34, 0.0  ;;  %1445 = vmatmul.bf16.gmra.mxu2 %v2714_v5  ;;  %v2937_v5 = vld [vmem:[%s3103_s28 + $0x194] sm:$0xf0] }
 0x19c   : > { %v3651_v9 = vpop.f32.mrf.mxu3 }
 0x19d   : > { %v1850_v10 = vmax.f32 %v1576_v2, 0.0  ;;  %v2041_v37 = vpack.c.bf16 %v1913_v55, %v1913_v55  ;;  %v2729_v55 = vld [vmem:[%s3103_s28 + $0x390] sm:$0xf] }
 0x19e   : > { %v1582_v32 = vpop.f32.mrf.mxu1  ;;  %v1406_v17 = vpop.f32.mrf.mxu2 }
 0x19f   : > { %v1978_v14 = vpack.c.bf16 %v1850_v10, %v1850_v10  ;;  %2170 = vst.msk [vmem:[%s3232_s19 + $0x174] sm:$0xf] %vm2076_vm3, %v2041_v37  ;;  %v1407_v42 = vadd.f32 %v3558_v27, %v1406_v17  ;;  %v3001_v10 = vld [vmem:[%s3103_s28 + $0x394] sm:$0xf0]  ;;  %v2750_v37 = vor.u32 %v3004_v63, %v2747_v25 }
 0x1a0   : > { %v1248_v0 = vpop.f32.mrf.mxu0 }
 0x1a1   : > { %2107 = vst.msk [vmem:[%s3232_s19 + $0x78] sm:$0xf] %vm2076_vm3, %v1978_v14  ;;  %v1249_v16 = vadd.f32 %v3558_v27, %v1248_v0  ;;  %v1736_v39 = vadd.f32 %v3595_v60, %v1407_v42  ;;  %v2466_v60 = vor.u32 %v2935_v30, %v2465_v28 }
 0x1a3   : > { %v1578_v23 = vadd.f32 %v1577_v57, %v1249_v16  ;;  %v1914_v46 = vmax.f32 %v1736_v39, 0.0  ;;  %v2730_v16 = vor.u32 %v3001_v10, %v2729_v55  ;;  %v2942_v55 = vld [vmem:[%s3103_s28 + $0x1c4] sm:$0xf]  ;;  %v2499_v10 = vld [vmem:[%s3103_s28 + $0x1c8] sm:$0xf0] }
 0x1a4   : > { %v3666_v31 = vpop.f32.mrf.mxu3 }
 0x1a5   : > { %v1851_v58 = vmax.f32 %v1578_v23, 0.0  ;;  %v2042_v38 = vpack.c.bf16 %v1914_v46, %v1914_v46 }
 0x1a6   : > { %v1585_v29 = vpop.f32.mrf.mxu1  ;;  %v1408_v1 = vpop.f32.mrf.mxu2 }
 0x1a7   : > { %v1979_v40 = vpack.c.bf16 %v1851_v58, %v1851_v58  ;;  %2171 = vst.msk [vmem:[%s3232_s19 + $0x178] sm:$0xf] %vm2076_vm3, %v2042_v38  ;;  %v1409_v57 = vadd.f32 %v3558_v27, %v1408_v1  ;;  %v2755_v1 = vld [vmem:[%s3103_s28 + $0x3c8] sm:$0xf0] }
 0x1a8   : > { %v1251_v44 = vpop.f32.mrf.mxu0 }
 0x1a9   : > { %2844 = vmatmul.msk.bf16.gmra.mxu1 %vm962_vm2, %v2478_v43  ;;  %2108 = vst.msk [vmem:[%s3232_s19 + $0x7c] sm:$0xf] %vm2076_vm3, %v1979_v40  ;;  %v1252_v45 = vadd.f32 %v3558_v27, %v1251_v44  ;;  %2877 = vmatmul.msk.bf16.gmra.mxu3 %vm962_vm2, %v2742_v51  ;;  %v1738_v8 = vadd.f32 %v3610_v18, %v1409_v57  ;;  %v3006_v40 = vld [vmem:[%s3103_s28 + $0x3c4] sm:$0xf]  ;;  %v2481_v44 = vld [vmem:[%s3103_s28 + $0x1a0] sm:$0xf] }
 0x1aa   : > { %v2494_v57 = vor.u32 %v2940_v35, %v2491_v61 }
 0x1ab   : > { %v1581_v11 = vadd.f32 %v1580_v53, %v1252_v45  ;;  %1290 = vmatmul.bf16.gmra.mxu0 %v2466_v60  ;;  %v1915_v48 = vmax.f32 %v1738_v8, 0.0  ;;  %1450 = vmatmul.bf16.gmra.mxu2 %v2722_v41  ;;  %v2939_v41 = vld [vmem:[%s3103_s28 + $0x1a4] sm:$0xf0] }
 0x1ac   : > { %v3679_v49 = vpop.f32.mrf.mxu3 }
 0x1ad   : > { %v1852_v12 = vmax.f32 %v1581_v11, 0.0  ;;  %v2043_v3 = vpack.c.bf16 %v1915_v48, %v1915_v48  ;;  %v2737_v48 = vld [vmem:[%s3103_s28 + $0x3a0] sm:$0xf] }
 0x1ae   : > { %v1587_v7 = vpop.f32.mrf.mxu1  ;;  %v1411_v54 = vpop.f32.mrf.mxu2 }
 0x1af   : > { %v1980_v52 = vpack.c.bf16 %v1852_v12, %v1852_v12  ;;  %2172 = vst.msk [vmem:[%s3232_s19 + $0x17c] sm:$0xf] %vm2076_vm3, %v2043_v3  ;;  %v1412_v18 = vadd.f32 %v3558_v27, %v1411_v54  ;;  %v3003_v12 = vld [vmem:[%s3103_s28 + $0x3a4] sm:$0xf0]  ;;  %v2758_v3 = vor.u32 %v3006_v40, %v2755_v1 }
 0x1b0   : > { %v1253_v26 = vpop.f32.mrf.mxu0 }
 0x1b1   : > { %2109 = vst.msk [vmem:[%s3232_s19 + $0x80] sm:$0xf] %vm2076_vm3, %v1980_v52  ;;  %v1254_v53 = vadd.f32 %v3558_v27, %v1253_v26  ;;  %v1741_v13 = vadd.f32 %v3623_v36, %v1412_v18  ;;  %v2474_v36 = vor.u32 %v2937_v5, %v2473_v4 }
 0x1b3   : > { %v1583_v62 = vadd.f32 %v1582_v32, %v1254_v53  ;;  %v1916_v21 = vmax.f32 %v1741_v13, 0.0  ;;  %v2738_v53 = vor.u32 %v3003_v12, %v2737_v48  ;;  %v2944_v48 = vld [vmem:[%s3103_s28 + $0x1d4] sm:$0xf]  ;;  %v2507_v12 = vld [vmem:[%s3103_s28 + $0x1d8] sm:$0xf0] }
 0x1b4   : > { %v3694_v6 = vpop.f32.mrf.mxu3 }
 0x1b5   : > { %v1853_v34 = vmax.f32 %v1583_v62, 0.0  ;;  %v2044_v14 = vpack.c.bf16 %v1916_v21, %v1916_v21 }
 0x1b6   : > { %v1590_v2 = vpop.f32.mrf.mxu1  ;;  %v1413_v42 = vpop.f32.mrf.mxu2 }
 0x1b7   : > { %v1981_v17 = vpack.c.bf16 %v1853_v34, %v1853_v34  ;;  %2173 = vst.msk [vmem:[%s3232_s19 + $0x180] sm:$0xf] %vm2076_vm3, %v2044_v14  ;;  %v1414_v32 = vadd.f32 %v3558_v27, %v1413_v42  ;;  %v2763_v42 = vld [vmem:[%s3103_s28 + $0x3d8] sm:$0xf0] }
 0x1b8   : > { %v1256_v0 = vpop.f32.mrf.mxu0 }
 0x1b9   : > { %2845 = vmatmul.msk.bf16.gmra.mxu1 %vm962_vm2, %v2486_v19  ;;  %2110 = vst.msk [vmem:[%s3232_s19 + $0x84] sm:$0xf] %vm2076_vm3, %v1981_v17  ;;  %v1257_v20 = vadd.f32 %v3558_v27, %v1256_v0  ;;  %2878 = vmatmul.msk.bf16.gmra.mxu3 %vm962_vm2, %v2750_v37  ;;  %v1743_v47 = vadd.f32 %v3638_v56, %v1414_v32  ;;  %v3008_v17 = vld [vmem:[%s3103_s28 + $0x3d4] sm:$0xf]  ;;  %v2489_v0 = vld [vmem:[%s3103_s28 + $0x1b0] sm:$0xf] }
 0x1ba   : > { %v2502_v32 = vor.u32 %v2942_v55, %v2499_v10 }
 0x1bb   : > { %v1586_v39 = vadd.f32 %v1585_v29, %v1257_v20  ;;  %1295 = vmatmul.bf16.gmra.mxu0 %v2474_v36  ;;  %v1917_v23 = vmax.f32 %v1743_v47, 0.0  ;;  %1455 = vmatmul.bf16.gmra.mxu2 %v2730_v16  ;;  %v2941_v16 = vld [vmem:[%s3103_s28 + $0x1b4] sm:$0xf0] }
 0x1bc   : > { %v3707_v24 = vpop.f32.mrf.mxu3 }
 0x1bd   : > { %v1854_v50 = vmax.f32 %v1586_v39, 0.0  ;;  %v2045_v43 = vpack.c.bf16 %v1917_v23, %v1917_v23  ;;  %v2745_v23 = vld [vmem:[%s3103_s28 + $0x3b0] sm:$0xf] }
 0x1be   : > { %v1592_v46 = vpop.f32.mrf.mxu1  ;;  %v1416_v30 = vpop.f32.mrf.mxu2 }
 0x1bf   : > { %v1982_v28 = vpack.c.bf16 %v1854_v50, %v1854_v50  ;;  %2174 = vst.msk [vmem:[%s3232_s19 + $0x184] sm:$0xf] %vm2076_vm3, %v2045_v43  ;;  %v1417_v56 = vadd.f32 %v3558_v27, %v1416_v30  ;;  %v3005_v50 = vld [vmem:[%s3103_s28 + $0x3b4] sm:$0xf0]  ;;  %v2766_v43 = vor.u32 %v3008_v17, %v2763_v42 }
 0x1c0   : > { %v1258_v58 = vpop.f32.mrf.mxu0 }
 0x1c1   : > { %2111 = vst.msk [vmem:[%s3232_s19 + $0x88] sm:$0xf] %vm2076_vm3, %v1982_v28  ;;  %v1259_v29 = vadd.f32 %v3558_v27, %v1258_v58  ;;  %v1746_v51 = vadd.f32 %v3651_v9, %v1417_v56  ;;  %v2482_v9 = vor.u32 %v2939_v41, %v2481_v44 }
 0x1c3   : > { %v1588_v38 = vadd.f32 %v1587_v7, %v1259_v29  ;;  %v1918_v60 = vmax.f32 %v1746_v51, 0.0  ;;  %v2746_v29 = vor.u32 %v3005_v50, %v2745_v23  ;;  %v2946_v23 = vld [vmem:[%s3103_s28 + $0x1e4] sm:$0xf]  ;;  %v2515_v50 = vld [vmem:[%s3103_s28 + $0x1e8] sm:$0xf0] }
 0x1c4   : > { %v3722_v45 = vpop.f32.mrf.mxu3 }
 0x1c5   : > { %v1855_v8 = vmax.f32 %v1588_v38, 0.0  ;;  %v2046_v52 = vpack.c.bf16 %v1918_v60, %v1918_v60 }
 0x1c6   : > { %v1595_v11 = vpop.f32.mrf.mxu1  ;;  %v1418_v18 = vpop.f32.mrf.mxu2 }
 0x1c7   : > { %v1983_v54 = vpack.c.bf16 %v1855_v8, %v1855_v8  ;;  %2175 = vst.msk [vmem:[%s3232_s19 + $0x188] sm:$0xf] %vm2076_vm3, %v2046_v52  ;;  %v1419_v7 = vadd.f32 %v3558_v27, %v1418_v18  ;;  %v2771_v18 = vld [vmem:[%s3103_s28 + $0x3e8] sm:$0xf0] }
 0x1c8   : > { %v1261_v26 = vpop.f32.mrf.mxu0 }
 0x1c9   : > { %2846 = vmatmul.msk.bf16.gmra.mxu1 %vm962_vm2, %v2494_v57  ;;  %2112 = vst.msk [vmem:[%s3232_s19 + $0x8c] sm:$0xf] %vm2076_vm3, %v1983_v54  ;;  %v1262_v59 = vadd.f32 %v3558_v27, %v1261_v26  ;;  %2879 = vmatmul.msk.bf16.gmra.mxu3 %vm962_vm2, %v2758_v3  ;;  %v1748_v22 = vadd.f32 %v3666_v31, %v1419_v7  ;;  %v3010_v54 = vld [vmem:[%s3103_s28 + $0x3e4] sm:$0xf]  ;;  %v2497_v26 = vld [vmem:[%s3103_s28 + $0x1c0] sm:$0xf] }
 0x1ca   : > { %v2510_v7 = vor.u32 %v2944_v48, %v2507_v12 }
 0x1cb   : > { %v1591_v13 = vadd.f32 %v1590_v2, %v1262_v59  ;;  %1300 = vmatmul.bf16.gmra.mxu0 %v2482_v9  ;;  %v1919_v62 = vmax.f32 %v1748_v22, 0.0  ;;  %1460 = vmatmul.bf16.gmra.mxu2 %v2738_v53  ;;  %v2943_v53 = vld [vmem:[%s3103_s28 + $0x1c4] sm:$0xf0] }
 0x1cc   : > { %v3735_v63 = vpop.f32.mrf.mxu3 }
 0x1cd   : > { %v1856_v25 = vmax.f32 %v1591_v13, 0.0  ;;  %v2047_v19 = vpack.c.bf16 %v1919_v62, %v1919_v62  ;;  %v2753_v62 = vld [vmem:[%s3103_s28 + $0x3c0] sm:$0xf] }
 0x1ce   : > { %v1597_v21 = vpop.f32.mrf.mxu1  ;;  %v1421_v5 = vpop.f32.mrf.mxu2 }
 0x1cf   : > { %v1984_v4 = vpack.c.bf16 %v1856_v25, %v1856_v25  ;;  %2176 = vst.msk [vmem:[%s3232_s19 + $0x18c] sm:$0xf] %vm2076_vm3, %v2047_v19  ;;  %v1422_v31 = vadd.f32 %v3558_v27, %v1421_v5  ;;  %v3007_v25 = vld [vmem:[%s3103_s28 + $0x3c4] sm:$0xf0]  ;;  %v2774_v19 = vor.u32 %v3010_v54, %v2771_v18 }
 0x1d0   : > { %v1263_v34 = vpop.f32.mrf.mxu0 }
 0x1d1   : > { %2113 = vst.msk [vmem:[%s3232_s19 + $0x90] sm:$0xf] %vm2076_vm3, %v1984_v4  ;;  %v1264_v2 = vadd.f32 %v3558_v27, %v1263_v34  ;;  %v1751_v37 = vadd.f32 %v3679_v49, %v1422_v31  ;;  %v2490_v49 = vor.u32 %v2941_v16, %v2489_v0 }
 0x1d3   : > { %v1593_v14 = vadd.f32 %v1592_v46, %v1264_v2  ;;  %v1920_v36 = vmax.f32 %v1751_v37, 0.0  ;;  %v2754_v2 = vor.u32 %v3007_v25, %v2753_v62  ;;  %v2948_v62 = vld [vmem:[%s3103_s28 + $0x1f4] sm:$0xf]  ;;  %v2523_v25 = vld [vmem:[%s3103_s28 + $0x1f8] sm:$0xf0] }
 0x1d4   : > { %v3750_v20 = vpop.f32.mrf.mxu3 }
 0x1d5   : > { %v1857_v47 = vmax.f32 %v1593_v14, 0.0  ;;  %v2048_v28 = vpack.c.bf16 %v1920_v36, %v1920_v36 }
 0x1d6   : > { %v1600_v39 = vpop.f32.mrf.mxu1  ;;  %v1423_v56 = vpop.f32.mrf.mxu2 }
 0x1d7   : > { %v1985_v30 = vpack.c.bf16 %v1857_v47, %v1857_v47  ;;  %2177 = vst.msk [vmem:[%s3232_s19 + $0x190] sm:$0xf] %vm2076_vm3, %v2048_v28  ;;  %v1424_v46 = vadd.f32 %v3558_v27, %v1423_v56  ;;  %v2779_v56 = vld [vmem:[%s3103_s28 + $0x3f8] sm:$0xf0] }
 0x1d8   : > { %v1266_v58 = vpop.f32.mrf.mxu0 }
 0x1d9   : > { %2847 = vmatmul.msk.bf16.gmra.mxu1 %vm962_vm2, %v2502_v32  ;;  %2114 = vst.msk [vmem:[%s3232_s19 + $0x94] sm:$0xf] %vm2076_vm3, %v1985_v30  ;;  %v1267_v35 = vadd.f32 %v3558_v27, %v1266_v58  ;;  %2880 = vmatmul.msk.bf16.gmra.mxu3 %vm962_vm2, %v2766_v43  ;;  %v1753_v61 = vadd.f32 %v3694_v6, %v1424_v46  ;;  %v3012_v30 = vld [vmem:[%s3103_s28 + $0x3f4] sm:$0xf]  ;;  %v2505_v58 = vld [vmem:[%s3103_s28 + $0x1d0] sm:$0xf] }
 0x1da   : > { %v2518_v46 = vor.u32 %v2946_v23, %v2515_v50 }
 0x1db   : > { %v1596_v51 = vadd.f32 %v1595_v11, %v1267_v35  ;;  %1305 = vmatmul.bf16.gmra.mxu0 %v2490_v49  ;;  %v1921_v38 = vmax.f32 %v1753_v61, 0.0  ;;  %1465 = vmatmul.bf16.gmra.mxu2 %v2746_v29  ;;  %v2945_v29 = vld [vmem:[%s3103_s28 + $0x1d4] sm:$0xf0] }
 0x1dc   : > { %v3763_v40 = vpop.f32.mrf.mxu3 }
 0x1dd   : > { %v1858_v1 = vmax.f32 %v1596_v51, 0.0  ;;  %v2049_v57 = vpack.c.bf16 %v1921_v38, %v1921_v38  ;;  %v2761_v51 = vld [vmem:[%s3103_s28 + $0x3d0] sm:$0xf]  ;;  %v3009_v38 = vld [vmem:[%s3103_s28 + $0x3d4] sm:$0xf0] }
 0x1de   : > { %v1602_v60 = vpop.f32.mrf.mxu1  ;;  %v1426_v41 = vpop.f32.mrf.mxu2 }
 0x1df   : > { %v1986_v44 = vpack.c.bf16 %v1858_v1, %v1858_v1  ;;  %2178 = vst.msk [vmem:[%s3232_s19 + $0x194] sm:$0xf] %vm2076_vm3, %v2049_v57  ;;  %v1427_v6 = vadd.f32 %v3558_v27, %v1426_v41  ;;  %v2782_v57 = vor.u32 %v3012_v30, %v2779_v56 }
 0x1e0   : > { %v1268_v8 = vpop.f32.mrf.mxu0 }
 0x1e1   : > { %2115 = vst.msk [vmem:[%s3232_s19 + $0x98] sm:$0xf] %vm2076_vm3, %v1986_v44  ;;  %v1269_v11 = vadd.f32 %v3558_v27, %v1268_v8  ;;  %v1756_v3 = vadd.f32 %v3707_v24, %v1427_v6  ;;  %v2498_v24 = vor.u32 %v2943_v53, %v2497_v26 }
 0x1e3   : > { %v1598_v52 = vadd.f32 %v1597_v21, %v1269_v11  ;;  %v1922_v9 = vmax.f32 %v1756_v3, 0.0  ;;  %v2762_v11 = vor.u32 %v3009_v38, %v2761_v51 }
 0x1e4   : > { %v3778_v59 = vpop.f32.mrf.mxu3 }
 0x1e5   : > { %v1859_v22 = vmax.f32 %v1598_v52, 0.0  ;;  %v2050_v4 = vpack.c.bf16 %v1922_v9, %v1922_v9 }
 0x1e6   : > { %v1605_v13 = vpop.f32.mrf.mxu1  ;;  %v1428_v31 = vpop.f32.mrf.mxu2 }
 0x1e7   : > { %v1987_v5 = vpack.c.bf16 %v1859_v22, %v1859_v22  ;;  %2179 = vst.msk [vmem:[%s3232_s19 + $0x198] sm:$0xf] %vm2076_vm3, %v2050_v4  ;;  %v1429_v21 = vadd.f32 %v3558_v27, %v1428_v31  ;;  %v2526_v31 = vor.u32 %v2948_v62, %v2523_v25 }
 0x1e8   : > { %v1271_v34 = vpop.f32.mrf.mxu0 }
 0x1e9   : > { %2848 = vmatmul.msk.bf16.gmra.mxu1 %vm962_vm2, %v2510_v7  ;;  %2116 = vst.msk [vmem:[%s3232_s19 + $0x9c] sm:$0xf] %vm2076_vm3, %v1987_v5  ;;  %v1272_v55 = vadd.f32 %v3558_v27, %v1271_v34  ;;  %2881 = vmatmul.msk.bf16.gmra.mxu3 %vm962_vm2, %v2774_v19  ;;  %v1758_v10 = vadd.f32 %v3722_v45, %v1429_v21  ;;  %v2947_v21 = vld [vmem:[%s3103_s28 + $0x1e4] sm:$0xf0] }
 0x1eb   : > { %v1601_v37 = vadd.f32 %v1600_v39, %v1272_v55  ;;  %1310 = vmatmul.bf16.gmra.mxu0 %v2498_v24  ;;  %v1923_v14 = vmax.f32 %v1758_v10, 0.0  ;;  %1470 = vmatmul.bf16.gmra.mxu2 %v2754_v2  ;;  %v2513_v24 = vld [vmem:[%s3103_s28 + $0x1e0] sm:$0xf]  ;;  %v3011_v10 = vld [vmem:[%s3103_s28 + $0x3e4] sm:$0xf0] }
 0x1ec   : > { %v3791_v17 = vpop.f32.mrf.mxu3  ;;  %v2769_v55 = vld [vmem:[%s3103_s28 + $0x3e0] sm:$0xf] }
 0x1ed   : > { %v1860_v42 = vmax.f32 %v1601_v37, 0.0  ;;  %v2051_v32 = vpack.c.bf16 %v1923_v14, %v1923_v14 }
 0x1ee   : > { %v1607_v36 = vpop.f32.mrf.mxu1  ;;  %v1431_v16 = vpop.f32.mrf.mxu2 }
 0x1ef   : > { %v1988_v0 = vpack.c.bf16 %v1860_v42, %v1860_v42  ;;  %2180 = vst.msk [vmem:[%s3232_s19 + $0x19c] sm:$0xf] %vm2076_vm3, %v2051_v32  ;;  %v1432_v45 = vadd.f32 %v3558_v27, %v1431_v16  ;;  %v2514_v32 = vor.u32 %v2947_v21, %v2513_v24 }
 0x1f0   : > { %v1273_v47 = vpop.f32.mrf.mxu0 }
 0x1f1   : > { %2117 = vst.msk [vmem:[%s3232_s19 + $0xa0] sm:$0xf] %vm2076_vm3, %v1988_v0  ;;  %v1274_v39 = vadd.f32 %v3558_v27, %v1273_v47  ;;  %v1761_v43 = vadd.f32 %v3735_v63, %v1432_v45  ;;  %v2506_v63 = vor.u32 %v2945_v29, %v2505_v58  ;;  %v2950_v58 = vld [vmem:[%s3103_s28 + $0x204] sm:$0xf]  ;;  %v2531_v29 = vld [vmem:[%s3103_s28 + $0x208] sm:$0xf0] }
 0x1f3   : > { %v1603_v28 = vadd.f32 %v1602_v60, %v1274_v39  ;;  %v1924_v49 = vmax.f32 %v1761_v43, 0.0 }
 0x1f4   : > { %v3808_v1 = vpop.f32.mrf.mxu3 }
 0x1f5   : > { %v1861_v35 = vmax.f32 %v1603_v28, 0.0  ;;  %v2052_v44 = vpack.c.bf16 %v1924_v49, %v1924_v49 }
 0x1f6   : > { %v1610_v61 = vpop.f32.mrf.mxu1  ;;  %v1433_v6 = vpop.f32.mrf.mxu2 }
 0x1f7   : > { %v1989_v41 = vpack.c.bf16 %v1861_v35, %v1861_v35  ;;  %2181 = vst.msk [vmem:[%s3232_s19 + $0x1a0] sm:$0xf] %vm2076_vm3, %v2052_v44  ;;  %v1434_v60 = vadd.f32 %v3558_v27, %v1433_v6  ;;  %v2521_v44 = vld [vmem:[%s3103_s28 + $0x1f0] sm:$0xf] }
 0x1f8   : > { %v1276_v8 = vpop.f32.mrf.mxu0 }
 0x1f9   : > { %2849 = vmatmul.msk.bf16.gmra.mxu1 %vm962_vm2, %v2518_v46  ;;  %2118 = vst.msk [vmem:[%s3232_s19 + $0xa4] sm:$0xf] %vm2076_vm3, %v1989_v41  ;;  %v1277_v48 = vadd.f32 %v3558_v27, %v1276_v8  ;;  %2882 = vmatmul.msk.bf16.gmra.mxu3 %vm962_vm2, %v2782_v57  ;;  %v1763_v12 = vadd.f32 %v3750_v20, %v1434_v60  ;;  %v2949_v41 = vld [vmem:[%s3103_s28 + $0x1f4] sm:$0xf0]  ;;  %v2777_v60 = vld [vmem:[%s3103_s28 + $0x3f0] sm:$0xf] }
 0x1fa   : > { %v2534_v57 = vor.u32 %v2950_v58, %v2531_v29  ;;  %v3013_v8 = vld [vmem:[%s3103_s28 + $0x3f4] sm:$0xf0] }
 0x1fb   : > { %v1606_v3 = vadd.f32 %v1605_v13, %v1277_v48  ;;  %1315 = vmatmul.bf16.gmra.mxu0 %v2506_v63  ;;  %v1925_v52 = vmax.f32 %v1763_v12, 0.0  ;;  %1475 = vmatmul.bf16.gmra.mxu2 %v2762_v11 }
 0x1fc   : > { %v3819_v53 = vpop.f32.mrf.mxu3 }
 0x1fd   : > { %v1862_v54 = vmax.f32 %v1606_v3, 0.0  ;;  %v2053_v9 = vpack.c.bf16 %v1925_v52, %v1925_v52  ;;  %v2522_v3 = vor.u32 %v2949_v41, %v2521_v44 }
 0x1fe   : > { %v1612_v18 = vpop.f32.mrf.mxu1  ;;  %v1436_v26 = vpop.f32.mrf.mxu2 }
 0x1ff   : > { %v1990_v7 = vpack.c.bf16 %v1862_v54, %v1862_v54  ;;  %2182 = vst.msk [vmem:[%s3232_s19 + $0x1a4] sm:$0xf] %vm2076_vm3, %v2053_v9  ;;  %v1437_v20 = vadd.f32 %v3558_v27, %v1436_v26  ;;  %v2778_v54 = vor.u32 %v3013_v8, %v2777_v60 }
 0x200   : > { %v1278_v22 = vpop.f32.mrf.mxu0 }
 0x201   : > { %2119 = vst.msk [vmem:[%s3232_s19 + $0xa8] sm:$0xf] %vm2076_vm3, %v1990_v7  ;;  %v1279_v13 = vadd.f32 %v3558_v27, %v1278_v22  ;;  %v1766_v19 = vadd.f32 %v3763_v40, %v1437_v20 }
 0x203   : > { %v1608_v4 = vadd.f32 %v1607_v36, %v1279_v13  ;;  %v1926_v5 = vmax.f32 %v1766_v19, 0.0  ;;  %v2770_v36 = vor.u32 %v3011_v10, %v2769_v55 }
 0x204   : > { %v3841_v45 = vpop.f32.mrf.mxu3 }
 0x205   : > { %v1863_v34 = vmax.f32 %v1608_v4, 0.0  ;;  %v2054_v37 = vpack.c.bf16 %v1926_v5, %v1926_v5 }
 0x206   : > { %v1615_v2 = vpop.f32.mrf.mxu1  ;;  %v1438_v42 = vpop.f32.mrf.mxu2 }
 0x207   : > { %v1991_v14 = vpack.c.bf16 %v1863_v34, %v1863_v34  ;;  %2183 = vst.msk [vmem:[%s3232_s19 + $0x1a8] sm:$0xf] %vm2076_vm3, %v2054_v37  ;;  %v1439_v0 = vadd.f32 %v3558_v27, %v1438_v42 }
 0x208   : > { %v1281_v40 = vpop.f32.mrf.mxu0 }
 0x209   : > { %2850 = vmatmul.msk.bf16.gmra.mxu1 %vm962_vm2, %v2526_v31  ;;  %2120 = vst.msk [vmem:[%s3232_s19 + $0xac] sm:$0xf] %vm2076_vm3, %v1991_v14  ;;  %v1282_v16 = vadd.f32 %v3558_v27, %v1281_v40  ;;  %v1768_v47 = vadd.f32 %v3778_v59, %v1439_v0 }
 0x20b   : > { %v1611_v39 = vadd.f32 %v1610_v61, %v1282_v16  ;;  %1320 = vmatmul.bf16.gmra.mxu0 %v2514_v32  ;;  %v1927_v23 = vmax.f32 %v1768_v47, 0.0  ;;  %1480 = vmatmul.bf16.gmra.mxu2 %v2770_v36 }
 0x20c   : > { %v3853_v51 = vpop.f32.mrf.mxu3 }
 0x20d   : > { %v1864_v50 = vmax.f32 %v1611_v39, 0.0  ;;  %v2055_v28 = vpack.c.bf16 %v1927_v23, %v1927_v23 }
 0x20e   : > { %v1617_v43 = vpop.f32.mrf.mxu1  ;;  %v1441_v56 = vpop.f32.mrf.mxu2 }
 0x20f   : > { %v1992_v30 = vpack.c.bf16 %v1864_v50, %v1864_v50  ;;  %2184 = vst.msk [vmem:[%s3232_s19 + $0x1ac] sm:$0xf] %vm2076_vm3, %v2055_v28  ;;  %v1442_v49 = vadd.f32 %v3558_v27, %v1441_v56 }
 0x210   : > { %v1283_v46 = vpop.f32.mrf.mxu0 }
 0x211   : > { %2121 = vst.msk [vmem:[%s3232_s19 + $0xb0] sm:$0xf] %vm2076_vm3, %v1992_v30  ;;  %v1284_v59 = vadd.f32 %v3558_v27, %v1283_v46  ;;  %v1771_v35 = vadd.f32 %v3791_v17, %v1442_v49 }
 0x213   : > { %v1613_v61 = vadd.f32 %v1612_v18, %v1284_v59  ;;  %v1928_v38 = vmax.f32 %v1771_v35, 0.0 }
 0x214   : > { %v1782_v13 = vpop.f32.mrf.mxu3 }
 0x215   : > { %v1865_v6 = vmax.f32 %v1613_v61, 0.0  ;;  %v2056_v11 = vpack.c.bf16 %v1928_v38, %v1928_v38 }
 0x216   : > { %v1620_v63 = vpop.f32.mrf.mxu1  ;;  %v1443_v12 = vpop.f32.mrf.mxu2 }
 0x217   : > { %v1993_v48 = vpack.c.bf16 %v1865_v6, %v1865_v6  ;;  %2185 = vst.msk [vmem:[%s3232_s19 + $0x1b0] sm:$0xf] %vm2076_vm3, %v2056_v11  ;;  %v1444_v17 = vadd.f32 %v3558_v27, %v1443_v12 }
 0x218   : > { %v1286_v52 = vpop.f32.mrf.mxu0 }
 0x219   : > { %2851 = vmatmul.msk.bf16.gmra.mxu1 %vm962_vm2, %v2534_v57  ;;  %2122 = vst.msk [vmem:[%s3232_s19 + $0xb4] sm:$0xf] %vm2076_vm3, %v1993_v48  ;;  %v1287_v18 = vadd.f32 %v3558_v27, %v1286_v52  ;;  %v1773_v9 = vadd.f32 %v3808_v1, %v1444_v17 }
 0x21b   : > { %v1616_v7 = vadd.f32 %v1615_v2, %v1287_v18  ;;  %1325 = vmatmul.bf16.gmra.mxu0 %v2522_v3  ;;  %v1929_v26 = vmax.f32 %v1773_v9, 0.0  ;;  %1485 = vmatmul.bf16.gmra.mxu2 %v2778_v54 }
 0x21c   : > { %v1785_v14 = vpop.f32.mrf.mxu3 }
 0x21d   : > { %v1866_v20 = vmax.f32 %v1616_v7, 0.0  ;;  %v2057_v62 = vpack.c.bf16 %v1929_v26, %v1929_v26 }
 0x21e   : > { %v1622_v22 = vpop.f32.mrf.mxu1  ;;  %v1446_v19 = vpop.f32.mrf.mxu2 }
 0x21f   : > { %v1994_v25 = vpack.c.bf16 %v1866_v20, %v1866_v20  ;;  %2186 = vst.msk [vmem:[%s3232_s19 + $0x1b4] sm:$0xf] %vm2076_vm3, %v2057_v62  ;;  %v1447_v4 = vadd.f32 %v3558_v27, %v1446_v19 }
 0x220   : > { %v1288_v5 = vpop.f32.mrf.mxu0 }
 0x221   : > { %2123 = vst.msk [vmem:[%s3232_s19 + $0xb8] sm:$0xf] %vm2076_vm3, %v1994_v25  ;;  %v1289_v1 = vadd.f32 %v3558_v27, %v1288_v5  ;;  %v1776_v31 = vadd.f32 %v3819_v53, %v1447_v4 }
 0x223   : > { %v1618_v24 = vadd.f32 %v1617_v43, %v1289_v1  ;;  %v1930_v21 = vmax.f32 %v1776_v31, 0.0  ;;  %v3886_v43 = vld [vmem:[%s3997_s2] ss:$0 sm:$0xff] }
 0x224   : > { %v1787_v30 = vpop.f32.mrf.mxu3 }
 0x225   : > { %v1867_v34 = vmax.f32 %v1618_v24, 0.0  ;;  %v2058_v55 = vpack.c.bf16 %v1930_v21, %v1930_v21 }
 0x226   : > { %v1625_v2 = vpop.f32.mrf.mxu1  ;;  %v1448_v37 = vpop.f32.mrf.mxu2 }
 0x227   : > { %v1995_v10 = vpack.c.bf16 %v1867_v34, %v1867_v34  ;;  %2187 = vst.msk [vmem:[%s3232_s19 + $0x1b8] sm:$0xf] %vm2076_vm3, %v2058_v55  ;;  %v1449_v42 = vadd.f32 %v3558_v27, %v1448_v37 }
 0x228   : > { %v1291_v32 = vpop.f32.mrf.mxu0 }
 0x229   : > { %2124 = vst.msk [vmem:[%s3232_s19 + $0xbc] sm:$0xf] %vm2076_vm3, %v1995_v10  ;;  %v1292_v0 = vadd.f32 %v3558_v27, %v1291_v32  ;;  %v1778_v53 = vadd.f32 %v3841_v45, %v1449_v42 }
 0x22b   : > { %v1621_v40 = vadd.f32 %v1620_v63, %v1292_v0  ;;  %v1931_v36 = vmax.f32 %v1778_v53, 0.0 }
 0x22c   : > { %v1790_v6 = vpop.f32.mrf.mxu3 }
 0x22d   : > { %v1868_v16 = vmax.f32 %v1621_v40, 0.0  ;;  %v2059_v39 = vpack.c.bf16 %v1931_v36, %v1931_v36 }
 0x22e   : > { %v1627_v47 = vpop.f32.mrf.mxu1  ;;  %v1451_v50 = vpop.f32.mrf.mxu2 }
 0x22f   : > { %v1996_v23 = vpack.c.bf16 %v1868_v16, %v1868_v16  ;;  %2188 = vst.msk [vmem:[%s3232_s19 + $0x1bc] sm:$0xf] %vm2076_vm3, %v2059_v39  ;;  %v1452_v28 = vadd.f32 %v3886_v43, %v1451_v50 }
 0x230   : > { %v1293_v27 = vpop.f32.mrf.mxu0 }
 0x231   : > { %2125 = vst.msk [vmem:[%s3232_s19 + $0xc0] sm:$0xf] %vm2076_vm3, %v1996_v23  ;;  %v1294_v45 = vadd.f32 %v3886_v43, %v1293_v27  ;;  %v1781_v56 = vadd.f32 %v3853_v51, %v1452_v28 }
 0x233   : > { %v1623_v49 = vadd.f32 %v1622_v22, %v1294_v45  ;;  %v1932_v46 = vmax.f32 %v1781_v56, 0.0 }
 0x234   : > { %v1792_v20 = vpop.f32.mrf.mxu3 }
 0x235   : > { %v1869_v59 = vmax.f32 %v1623_v49, 0.0  ;;  %v2060_v29 = vpack.c.bf16 %v1932_v46, %v1932_v46 }
 0x236   : > { %v1630_v58 = vpop.f32.mrf.mxu1  ;;  %v1453_v61 = vpop.f32.mrf.mxu2 }
 0x237   : > { %v1997_v35 = vpack.c.bf16 %v1869_v59, %v1869_v59  ;;  %2189 = vst.msk [vmem:[%s3232_s19 + $0x1c0] sm:$0xf] %vm2076_vm3, %v2060_v29  ;;  %v1454_v38 = vadd.f32 %v3886_v43, %v1453_v61 }
 0x238   : > { %v1296_v57 = vpop.f32.mrf.mxu0 }
 0x239   : > { %2126 = vst.msk [vmem:[%s3232_s19 + $0xc4] sm:$0xf] %vm2076_vm3, %v1997_v35  ;;  %v1297_v44 = vadd.f32 %v3886_v43, %v1296_v57  ;;  %v1783_v41 = vadd.f32 %v1782_v13, %v1454_v38 }
 0x23b   : > { %v1626_v51 = vadd.f32 %v1625_v2, %v1297_v44  ;;  %v1933_v63 = vmax.f32 %v1783_v41, 0.0 }
 0x23c   : > { %v1795_v10 = vpop.f32.mrf.mxu3 }
 0x23d   : > { %v1870_v60 = vmax.f32 %v1626_v51, 0.0  ;;  %v2061_v11 = vpack.c.bf16 %v1933_v63, %v1933_v63 }
 0x23e   : > { %v1632_v8 = vpop.f32.mrf.mxu1  ;;  %v1456_v12 = vpop.f32.mrf.mxu2 }
 0x23f   : > { %v1998_v48 = vpack.c.bf16 %v1870_v60, %v1870_v60  ;;  %2190 = vst.msk [vmem:[%s3232_s19 + $0x1c4] sm:$0xf] %vm2076_vm3, %v2061_v11  ;;  %v1457_v3 = vadd.f32 %v3886_v43, %v1456_v12 }
 0x240   : > { %v1298_v17 = vpop.f32.mrf.mxu0 }
 0x241   : > { %2127 = vst.msk [vmem:[%s3232_s19 + $0xc8] sm:$0xf] %vm2076_vm3, %v1998_v48  ;;  %v1299_v52 = vadd.f32 %v3886_v43, %v1298_v17  ;;  %v1786_v54 = vadd.f32 %v1785_v14, %v1457_v3 }
 0x243   : > { %v1628_v18 = vadd.f32 %v1627_v47, %v1299_v52  ;;  %v1934_v9 = vmax.f32 %v1786_v54, 0.0 }
 0x244   : > { %v1797_v27 = vpop.f32.mrf.mxu3 }
 0x245   : > { %v1871_v7 = vmax.f32 %v1628_v18, 0.0  ;;  %v2062_v22 = vpack.c.bf16 %v1934_v9, %v1934_v9 }
 0x246   : > { %v1635_v26 = vpop.f32.mrf.mxu1  ;;  %v1458_v62 = vpop.f32.mrf.mxu2 }
 0x247   : > { %v1999_v13 = vpack.c.bf16 %v1871_v7, %v1871_v7  ;;  %2191 = vst.msk [vmem:[%s3232_s19 + $0x1c8] sm:$0xf] %vm2076_vm3, %v2062_v22  ;;  %v1459_v25 = vadd.f32 %v3886_v43, %v1458_v62 }
 0x248   : > { %v1301_v19 = vpop.f32.mrf.mxu0 }
 0x249   : > { %2128 = vst.msk [vmem:[%s3232_s19 + $0xcc] sm:$0xf] %vm2076_vm3, %v1999_v13  ;;  %v1302_v4 = vadd.f32 %v3886_v43, %v1301_v19  ;;  %v1788_v5 = vadd.f32 %v1787_v30, %v1459_v25 }
 0x24b   : > { %v1631_v1 = vadd.f32 %v1630_v58, %v1302_v4  ;;  %v1935_v31 = vmax.f32 %v1788_v5, 0.0 }
 0x24c   : > { %v1800_v41 = vpop.f32.mrf.mxu3 }
 0x24d   : > { %v1872_v24 = vmax.f32 %v1631_v1, 0.0  ;;  %v2063_v34 = vpack.c.bf16 %v1935_v31, %v1935_v31 }
 0x24e   : > { %v1637_v21 = vpop.f32.mrf.mxu1  ;;  %v1461_v55 = vpop.f32.mrf.mxu2 }
 0x24f   : > { %v2000_v2 = vpack.c.bf16 %v1872_v24, %v1872_v24  ;;  %2192 = vst.msk [vmem:[%s3232_s19 + $0x1cc] sm:$0xf] %vm2076_vm3, %v2063_v34  ;;  %v1462_v37 = vadd.f32 %v3886_v43, %v1461_v55 }
 0x250   : > { %v1303_v14 = vpop.f32.mrf.mxu0 }
 0x251   : > { %2129 = vst.msk [vmem:[%s3232_s19 + $0xd0] sm:$0xf] %vm2076_vm3, %v2000_v2  ;;  %v1304_v42 = vadd.f32 %v3886_v43, %v1303_v14  ;;  %v1791_v32 = vadd.f32 %v1790_v6, %v1462_v37 }
 0x253   : > { %v1633_v0 = vadd.f32 %v1632_v8, %v1304_v42  ;;  %v1936_v53 = vmax.f32 %v1791_v32, 0.0 }
 0x254   : > { %v1802_v7 = vpop.f32.mrf.mxu3 }
 0x255   : > { %v1873_v40 = vmax.f32 %v1633_v0, 0.0  ;;  %v2064_v16 = vpack.c.bf16 %v1936_v53, %v1936_v53 }
 0x256   : > { %v1640_v36 = vpop.f32.mrf.mxu1  ;;  %v1463_v39 = vpop.f32.mrf.mxu2 }
 0x257   : > { %v2001_v47 = vpack.c.bf16 %v1873_v40, %v1873_v40  ;;  %2193 = vst.msk [vmem:[%s3232_s19 + $0x1d0] sm:$0xf] %vm2076_vm3, %v2064_v16  ;;  %v1464_v23 = vadd.f32 %v3886_v43, %v1463_v39 }
 0x258   : > { %v1306_v50 = vpop.f32.mrf.mxu0 }
 0x259   : > { %2130 = vst.msk [vmem:[%s3232_s19 + $0xd4] sm:$0xf] %vm2076_vm3, %v2001_v47  ;;  %v1307_v28 = vadd.f32 %v3886_v43, %v1306_v50  ;;  %v1793_v45 = vadd.f32 %v1792_v20, %v1464_v23 }
 0x25b   : > { %v1636_v30 = vadd.f32 %v1635_v26, %v1307_v28  ;;  %v1937_v56 = vmax.f32 %v1793_v45, 0.0 }
 0x25c   : > { %v1805_v2 = vpop.f32.mrf.mxu3 }
 0x25d   : > { %v1874_v49 = vmax.f32 %v1636_v30, 0.0  ;;  %v2065_v59 = vpack.c.bf16 %v1937_v56, %v1937_v56 }
 0x25e   : > { %v1642_v46 = vpop.f32.mrf.mxu1  ;;  %v1466_v29 = vpop.f32.mrf.mxu2 }
 0x25f   : > { %v2002_v58 = vpack.c.bf16 %v1874_v49, %v1874_v49  ;;  %2194 = vst.msk [vmem:[%s3232_s19 + $0x1d4] sm:$0xf] %vm2076_vm3, %v2065_v59  ;;  %v1467_v35 = vadd.f32 %v3886_v43, %v1466_v29 }
 0x260   : > { %v1308_v61 = vpop.f32.mrf.mxu0 }
 0x261   : > { %2131 = vst.msk [vmem:[%s3232_s19 + $0xd8] sm:$0xf] %vm2076_vm3, %v2002_v58  ;;  %v1309_v38 = vadd.f32 %v3886_v43, %v1308_v61  ;;  %v1796_v57 = vadd.f32 %v1795_v10, %v1467_v35 }
 0x263   : > { %v1638_v44 = vadd.f32 %v1637_v21, %v1309_v38  ;;  %v1938_v51 = vmax.f32 %v1796_v57, 0.0 }
 0x264   : > { %v1807_v50 = vpop.f32.mrf.mxu3 }
 0x265   : > { %v1875_v6 = vmax.f32 %v1638_v44, 0.0  ;;  %v2066_v60 = vpack.c.bf16 %v1938_v51, %v1938_v51 }
 0x266   : > { %v1645_v63 = vpop.f32.mrf.mxu1  ;;  %v1468_v11 = vpop.f32.mrf.mxu2 }
 0x267   : > { %v2003_v8 = vpack.c.bf16 %v1875_v6, %v1875_v6  ;;  %2195 = vst.msk [vmem:[%s3232_s19 + $0x1d8] sm:$0xf] %vm2076_vm3, %v2066_v60  ;;  %v1469_v48 = vadd.f32 %v3886_v43, %v1468_v11 }
 0x268   : > { %v1311_v12 = vpop.f32.mrf.mxu0 }
 0x269   : > { %2132 = vst.msk [vmem:[%s3232_s19 + $0xdc] sm:$0xf] %vm2076_vm3, %v2003_v8  ;;  %v1312_v3 = vadd.f32 %v3886_v43, %v1311_v12  ;;  %v1798_v17 = vadd.f32 %v1797_v27, %v1469_v48 }
 0x26b   : > { %v1641_v52 = vadd.f32 %v1640_v36, %v1312_v3  ;;  %v1939_v54 = vmax.f32 %v1798_v17, 0.0  ;;  %v1332_v17 = vadd.f32 %v3886_v43, %v3234_v15 }
 0x26c   : > { %v1810_v57 = vpop.f32.mrf.mxu3 }
 0x26d   : > { %v1876_v18 = vmax.f32 %v1641_v52, 0.0  ;;  %v2067_v26 = vpack.c.bf16 %v1939_v54, %v1939_v54 }
 0x26e   : > { %v1647_v9 = vpop.f32.mrf.mxu1  ;;  %v1471_v22 = vpop.f32.mrf.mxu2 }
 0x26f   : > { %v2004_v20 = vpack.c.bf16 %v1876_v18, %v1876_v18  ;;  %2196 = vst.msk [vmem:[%s3232_s19 + $0x1dc] sm:$0xf] %vm2076_vm3, %v2067_v26  ;;  %v1472_v13 = vadd.f32 %v3886_v43, %v1471_v22 }
 0x270   : > { %v1313_v62 = vpop.f32.mrf.mxu0 }
 0x271   : > { %2133 = vst.msk [vmem:[%s3232_s19 + $0xe0] sm:$0xf] %vm2076_vm3, %v2004_v20  ;;  %v1314_v25 = vadd.f32 %v3886_v43, %v1313_v62  ;;  %v1801_v19 = vadd.f32 %v1800_v41, %v1472_v13 }
 0x273   : > { %v1643_v4 = vadd.f32 %v1642_v46, %v1314_v25  ;;  %v1940_v5 = vmax.f32 %v1801_v19, 0.0 }
 0x274   : > { %v1812_v18 = vpop.f32.mrf.mxu3 }
 0x275   : > { %v1877_v1 = vmax.f32 %v1643_v4, 0.0  ;;  %v2068_v24 = vpack.c.bf16 %v1940_v5, %v1940_v5 }
 0x276   : > { %v1650_v31 = vpop.f32.mrf.mxu1  ;;  %v1473_v34 = vpop.f32.mrf.mxu2 }
 0x277   : > { %v2005_v21 = vpack.c.bf16 %v1877_v1, %v1877_v1  ;;  %2197 = vst.msk [vmem:[%s3232_s19 + $0x1e0] sm:$0xf] %vm2076_vm3, %v2068_v24  ;;  %v1474_v55 = vadd.f32 %v3886_v43, %v1473_v34  ;;  %v1334_v1 = vadd.f32 %v3886_v43, %v3249_v33 }
 0x278   : > { %v1316_v10 = vpop.f32.mrf.mxu0 }
 0x279   : > { %2134 = vst.msk [vmem:[%s3232_s19 + $0xe4] sm:$0xf] %vm2076_vm3, %v2005_v21  ;;  %v1317_v37 = vadd.f32 %v3886_v43, %v1316_v10  ;;  %v1803_v14 = vadd.f32 %v1802_v7, %v1474_v55 }
 0x27b   : > { %v1646_v42 = vadd.f32 %v1645_v63, %v1317_v37  ;;  %v1941_v32 = vmax.f32 %v1803_v14, 0.0 }
 0x27c   : > { %v1815_v10 = vpop.f32.mrf.mxu3 }
 0x27d   : > { %v1878_v0 = vmax.f32 %v1646_v42, 0.0  ;;  %v2069_v40 = vpack.c.bf16 %v1941_v32, %v1941_v32 }
 0x27e   : > { %v1652_v53 = vpop.f32.mrf.mxu1  ;;  %v1476_v16 = vpop.f32.mrf.mxu2 }
 0x27f   : > { %v2006_v36 = vpack.c.bf16 %v1878_v0, %v1878_v0  ;;  %2198 = vst.msk [vmem:[%s3232_s19 + $0x1e4] sm:$0xf] %vm2076_vm3, %v2069_v40  ;;  %v1477_v47 = vadd.f32 %v3886_v43, %v1476_v16 }
 0x280   : > { %v1318_v39 = vpop.f32.mrf.mxu0 }
 0x281   : > { %2135 = vst.msk [vmem:[%s3232_s19 + $0xe8] sm:$0xf] %vm2076_vm3, %v2006_v36  ;;  %v1319_v23 = vadd.f32 %v3886_v43, %v1318_v39  ;;  %v1806_v28 = vadd.f32 %v1805_v2, %v1477_v47 }
 0x283   : > { %v1648_v27 = vadd.f32 %v1647_v9, %v1319_v23  ;;  %v1942_v45 = vmax.f32 %v1806_v28, 0.0 }
 0x284   : > { %v1817_v28 = vpop.f32.mrf.mxu3 }
 0x285   : > { %v1879_v30 = vmax.f32 %v1648_v27, 0.0  ;;  %v2070_v49 = vpack.c.bf16 %v1942_v45, %v1942_v45 }
 0x286   : > { %v1655_v56 = vpop.f32.mrf.mxu1  ;;  %v1478_v59 = vpop.f32.mrf.mxu2 }
 0x287   : > { %v2007_v46 = vpack.c.bf16 %v1879_v30, %v1879_v30  ;;  %2199 = vst.msk [vmem:[%s3232_s19 + $0x1e8] sm:$0xf] %vm2076_vm3, %v2070_v49  ;;  %v1479_v58 = vadd.f32 %v3886_v43, %v1478_v59 }
 0x288   : > { %v1321_v29 = vpop.f32.mrf.mxu0 }
 0x289   : > { %2136 = vst.msk [vmem:[%s3232_s19 + $0xec] sm:$0xf] %vm2076_vm3, %v2007_v46  ;;  %v1322_v35 = vadd.f32 %v3886_v43, %v1321_v29  ;;  %v1808_v61 = vadd.f32 %v1807_v50, %v1479_v58 }
 0x28b   : > { %v1651_v38 = vadd.f32 %v1650_v31, %v1322_v35  ;;  %v1943_v44 = vmax.f32 %v1808_v61, 0.0 }
 0x28d   : > { %v1880_v41 = vmax.f32 %v1651_v38, 0.0  ;;  %v2071_v6 = vpack.c.bf16 %v1943_v44, %v1943_v44 }
 0x28e   : > { %v1657_v51 = vpop.f32.mrf.mxu1  ;;  %v1481_v60 = vpop.f32.mrf.mxu2 }
 0x28f   : > { %v2008_v63 = vpack.c.bf16 %v1880_v41, %v1880_v41  ;;  %2200 = vst.msk [vmem:[%s3232_s19 + $0x1ec] sm:$0xf] %vm2076_vm3, %v2071_v6  ;;  %v1482_v8 = vadd.f32 %v3886_v43, %v1481_v60 }
 0x290   : > { %v1323_v11 = vpop.f32.mrf.mxu0 }
 0x291   : > { %2137 = vst.msk [vmem:[%s3232_s19 + $0xf0] sm:$0xf] %vm2076_vm3, %v2008_v63  ;;  %v1324_v48 = vadd.f32 %v3886_v43, %v1323_v11  ;;  %v1811_v12 = vadd.f32 %v1810_v57, %v1482_v8 }
 0x293   : > { %v1653_v3 = vadd.f32 %v1652_v53, %v1324_v48  ;;  %v1944_v52 = vmax.f32 %v1811_v12, 0.0 }
 0x295   : > { %v1881_v54 = vmax.f32 %v1653_v3, 0.0  ;;  %v2072_v7 = vpack.c.bf16 %v1944_v52, %v1944_v52 }
 0x296   : > { %v1660_v9 = vpop.f32.mrf.mxu1  ;;  %v1483_v22 = vpop.f32.mrf.mxu2 }
 0x297   : > { %v1661_v26 = vadd.f32 %v1660_v9, %v1332_v17  ;;  %v2009_v20 = vpack.c.bf16 %v1881_v54, %v1881_v54  ;;  %2201 = vst.msk [vmem:[%s3232_s19 + $0x1f0] sm:$0xf] %vm2076_vm3, %v2072_v7  ;;  %v1484_v62 = vadd.f32 %v3886_v43, %v1483_v22 }
 0x298   : > { %v1326_v25 = vpop.f32.mrf.mxu0 }
 0x299   : > { %v1884_v13 = vmax.f32 %v1661_v26, 0.0  ;;  %2138 = vst.msk [vmem:[%s3232_s19 + $0xf4] sm:$0xf] %vm2076_vm3, %v2009_v20  ;;  %v1327_v15 = vadd.f32 %v3886_v43, %v1326_v25  ;;  %v1813_v4 = vadd.f32 %v1812_v18, %v1484_v62 }
 0x29b   : > { %v2012_v19 = vpack.c.bf16 %v1884_v13, %v1884_v13  ;;  %v1656_v5 = vadd.f32 %v1655_v56, %v1327_v15  ;;  %v1945_v31 = vmax.f32 %v1813_v4, 0.0 }
 0x29d   : > { %2141 = vst.msk [vmem:[%s3232_s19 + $0x100] sm:$0xf] %vm2076_vm3, %v2012_v19  ;;  %v1882_v24 = vmax.f32 %v1656_v5, 0.0  ;;  %v2073_v34 = vpack.c.bf16 %v1945_v31, %v1945_v31 }
 0x29e   : > { %v1662_v21 = vpop.f32.mrf.mxu1  ;;  %v1486_v37 = vpop.f32.mrf.mxu2 }
 0x29f   : > { %v1663_v2 = vadd.f32 %v1662_v21, %v1334_v1  ;;  %v2010_v55 = vpack.c.bf16 %v1882_v24, %v1882_v24  ;;  %2202 = vst.msk [vmem:[%s3232_s19 + $0x1f4] sm:$0xf] %vm2076_vm3, %v2073_v34  ;;  %v1487_v42 = vadd.f32 %v3886_v43, %v1486_v37 }
 0x2a0   : > { %v1328_v32 = vpop.f32.mrf.mxu0 }
 0x2a1   : > { %v1885_v14 = vmax.f32 %v1663_v2, 0.0  ;;  %2139 = vst.msk [vmem:[%s3232_s19 + $0xf8] sm:$0xf] %vm2076_vm3, %v2010_v55  ;;  %v1329_v33 = vadd.f32 %v3886_v43, %v1328_v32  ;;  %v1816_v53 = vadd.f32 %v1815_v10, %v1487_v42 }
 0x2a3   : > { %v2013_v0 = vpack.c.bf16 %v1885_v14, %v1885_v14  ;;  %v1658_v40 = vadd.f32 %v1657_v51, %v1329_v33  ;;  %v1946_v36 = vmax.f32 %v1816_v53, 0.0 }
 0x2a5   : > { %2142 = vst.msk [vmem:[%s3232_s19 + $0x104] sm:$0xf] %vm2076_vm3, %v2013_v0  ;;  %v1883_v16 = vmax.f32 %v1658_v40, 0.0  ;;  %v2074_v47 = vpack.c.bf16 %v1946_v36, %v1946_v36 }
 0x2a6   : > { %v1488_v23 = vpop.f32.mrf.mxu2 }
 0x2a7   : > { %v2011_v39 = vpack.c.bf16 %v1883_v16, %v1883_v16  ;;  %2203 = vst.msk [vmem:[%s3232_s19 + $0x1f8] sm:$0xf] %vm2076_vm3, %v2074_v47  ;;  %v1489_v50 = vadd.f32 %v3886_v43, %v1488_v23 }
 0x2a9   : > { %2140 = vst.msk [vmem:[%s3232_s19 + $0xfc] sm:$0xf] %vm2076_vm3, %v2011_v39  ;;  %v1818_v27 = vadd.f32 %v1817_v28, %v1489_v50 }
 0x2ab   : > { %v1947_v45 = vmax.f32 %v1818_v27, 0.0 }
 0x2ad   : > { %v2075_v30 = vpack.c.bf16 %v1947_v45, %v1947_v45 }
 0x2af   : > { %2204 = vst.msk [vmem:[%s3232_s19 + $0x1fc] sm:$0xf] %vm2076_vm3, %v2075_v30 }
 0x2b0 PF: > { %s13_s12 = sadd.s32 1, %s3051_s12  }
 0x2b1   : > { %p10_p4 = scmp.ge.s32.totalorder %s13_s12, 4  }
 0x2b3   :  { %12 = sbr.rel (!%p10_p4) target bundleno = 1 (0x1), region = 62 }

</bundles_post_ra>
